<compile_context>
chip_gen: v7x
topology: tpu7x:2x2x1
jax: 0.10.0
libtpu: 0.0.40
codegen_flags: <defaults>
</compile_context>

<pallas_src>
import math

import jax
import jax.numpy as jnp
from jax import lax
from jax.experimental import pallas as pl
from jax.experimental.pallas import tpu as pltpu


def _layernorm(x, w, b, eps=1e-5):
    mu = jnp.mean(x, axis=-1, keepdims=True)
    xc = x - mu
    var = jnp.mean(xc * xc, axis=-1, keepdims=True)
    return xc * lax.rsqrt(var + eps) * w + b


def _gelu_exact(x):
    # nn.GELU() default is the exact erf-based GELU.
    return 0.5 * x * (1.0 + lax.erf(x * (1.0 / math.sqrt(2.0))))


def _bf16(x):
    return x.astype(jnp.bfloat16)


def _dot(a, b):
    return jnp.dot(a, b, preferred_element_type=jnp.float32)


def _pick_mlp_chunk(M):
    # Prefer the widest chunk that divides M (amortizes MXU issue/pop overhead
    # and halves the number of (rows, C) accumulate adds).
    for t in (1024, 512, 256, 128):
        if M % t == 0:
            return min(t, M)
    return M


def _pick_head_group(num_heads, head_dim):
    # Largest divisor g of H with g*head_dim <= 256 (fills the MXU contraction).
    best = 1
    for g in range(1, num_heads + 1):
        if num_heads % g == 0 and g * head_dim <= 256:
            best = g
    return best


def _pick_batch_tile(N, L, target_rows=256):
    # Stack Nb batch elements per grid step so the GEMMs see ~target_rows rows.
    valid = [d for d in range(1, N + 1)
             if N % d == 0 and (d == N or (d * L) % 8 == 0)]
    within = [d for d in valid if d * L <= max(target_rows, L)]
    return max(within) if within else min(valid)


def _vmem_capacity_bytes():
    try:
        return int(pltpu.get_tpu_info().vmem_capacity_bytes)
    except Exception:
        return 128 << 20  # v5e / v6e physical VMEM


def make_block_kernel(num_heads, head_group, mlp_chunk, batch_tile, seq_len):
    H, G, Nb, L = num_heads, head_group, batch_tile, seq_len

    def kernel(
        x_ref,            # (Nb*L, C)  row-stacked batch tile (f32 or input dtype)
        ln1w, ln1b,       # (1, C)     f32
        wqkv, bqkv,       # (C, 3C) bf16 (q-scale folded), (1, 3C) f32
        wout, bout,       # (C, C) bf16, (1, C) f32
        ln2w, ln2b,       # (1, C)     f32
        wfc, bfc,         # (C, M) bf16, (1, M) f32
        wproj, bproj,     # (M, C) bf16, (1, C) f32
        o_ref,            # (Nb*L, C)
    ):
        x = x_ref[...].astype(jnp.float32)           # (R, C)
        R, C = x.shape
        hd = C // H
        M = wfc.shape[1]

        # ---------------- attention branch ----------------
        y16 = _bf16(_layernorm(x, ln1w[...], ln1b[...]))
        # Single bf16 copy of the QKV activations (Q columns already pre-scaled).
        qkv16 = _bf16(_dot(y16, wqkv[...]) + bqkv[...])   # (R, 3C)

        attn_acc = jnp.zeros((R, C), jnp.float32)
        for g0 in range(0, H, G):
            head_outs = []
            for h in range(g0, g0 + G):
                qh = qkv16[:, h * hd:(h + 1) * hd].reshape(Nb, L, hd)
                kh = qkv16[:, C + h * hd:C + (h + 1) * hd].reshape(Nb, L, hd)
                vh = qkv16[:, 2 * C + h * hd:2 * C + (h + 1) * hd].reshape(Nb, L, hd)
                s = jnp.einsum("bld,bmd->blm", qh, kh,
                               preferred_element_type=jnp.float32)   # (Nb, L, L)
                s = s - jnp.max(s, axis=-1, keepdims=True)
                p = jnp.exp(s)
                p = p * pl.reciprocal(jnp.sum(p, axis=-1, keepdims=True),
                                      approx=True)
                ho = jnp.einsum("blm,bmd->bld", _bf16(p), vh,
                                preferred_element_type=jnp.float32)  # (Nb, L, hd)
                head_outs.append(_bf16(ho).reshape(R, hd))
            # Grouped out-projection: contraction dim G*hd per GEMM instead of hd,
            # and G-fold fewer (R, C) f32 accumulate adds.
            ho_g = head_outs[0] if G == 1 else jnp.concatenate(head_outs, axis=-1)
            attn_acc = attn_acc + _dot(ho_g, wout[g0 * hd:(g0 + G) * hd, :])

        x = x + attn_acc + bout[...]

        # ---------------- MLP branch, tiled over M ----------------
        z16 = _bf16(_layernorm(x, ln2w[...], ln2b[...]))
        mlp_acc = jnp.zeros((R, C), jnp.float32)
        for c in range(M // mlp_chunk):
            lo, hi = c * mlp_chunk, (c + 1) * mlp_chunk
            hmid = _dot(z16, wfc[:, lo:hi]) + bfc[:, lo:hi]          # (R, TM) f32
            hmid = _gelu_exact(hmid)
            mlp_acc = mlp_acc + _dot(_bf16(hmid), wproj[lo:hi, :])   # (R, C)

        x = x + mlp_acc + bproj[...]
        o_ref[...] = x.astype(o_ref.dtype)

    return kernel


def custom_residual_attention_block(x_lnc, params, num_heads,
                                    weight_dtype=jnp.bfloat16):
    """x_lnc: (L, N, C) seq-major, like the PyTorch module."""
    L, N, C = x_lnc.shape
    assert C % num_heads == 0
    hd = C // num_heads
    scale = hd ** (-0.5)
    M = params["wfc_t"].shape[1]

    # Fold the 1/sqrt(hd) q-scale into the Q columns of the QKV projection.
    col_scale = jnp.concatenate(
        [jnp.full((C,), scale, jnp.float32), jnp.ones((2 * C,), jnp.float32)])
    wqkv = (params["wqkv_t"] * col_scale[None, :]).astype(weight_dtype)   # (C, 3C)
    bqkv = (params["bqkv"] * col_scale[None, :]).astype(jnp.float32)      # (1, 3C)
    wout = params["wout_t"].astype(weight_dtype)                          # (C, C)
    wfc = params["wfc_t"].astype(weight_dtype)                            # (C, M)
    wproj = params["wproj_t"].astype(weight_dtype)                        # (M, C)

    param_list = [
        params["ln1_w"].astype(jnp.float32), params["ln1_b"].astype(jnp.float32),
        wqkv, bqkv,
        wout, params["bout"].astype(jnp.float32),
        params["ln2_w"].astype(jnp.float32), params["ln2_b"].astype(jnp.float32),
        wfc, params["bfc"].astype(jnp.float32),
        wproj, params["bproj"].astype(jnp.float32),
    ]

    Nb = _pick_batch_tile(N, L)
    G = _pick_head_group(num_heads, hd)
    mlp_chunk = _pick_mlp_chunk(M)
    R = Nb * L

    def const_spec(a):
        # Grid-invariant weight: constant index_map + single buffer. Double
        # buffering something that is fetched once only burns VMEM.
        nd = a.ndim
        return pl.BlockSpec(a.shape, lambda n, _nd=nd: (0,) * _nd,
                            pipeline_mode=pl.Buffered(1))

    kernel = make_block_kernel(num_heads, G, mlp_chunk, Nb, L)

    # VMEM budget: single-buffered weights + double-buffered activation tiles +
    # live intermediates (QKV, per-group scores/probs, MLP chunk), clamped to the
    # physical VMEM of the current chip generation minus headroom (legal on
    # v7x's 64 MiB as well as v5e/v6e's 128 MiB).
    x_itemsize = jnp.dtype(x_lnc.dtype).itemsize
    weight_bytes = sum(int(a.size) * jnp.dtype(a.dtype).itemsize
                       for a in param_list)
    io_bytes = 2 * (2 * R * C * x_itemsize)
    act_bytes = (10 * R * C * 4                     # f32 working copies / accs
                 + R * 3 * C * 2                    # bf16 QKV
                 + 2 * G * Nb * L * L * 4           # scores + probs per group
                 + 2 * R * mlp_chunk * 4)           # fc-chunk intermediate
    needed = weight_bytes + io_bytes + act_bytes + (16 << 20)
    cap = _vmem_capacity_bytes()
    vmem_limit = int(min(max(needed, 32 << 20), cap - (8 << 20)))

    # Batch-major, row-stacked layout: (L, N, C) -> (N*L, C); each grid step owns
    # Nb*L contiguous rows so every GEMM sees a tall LHS tile (MXU row fill).
    x_in = jnp.transpose(x_lnc, (1, 0, 2)).reshape(N * L, C)
    x_spec = pl.BlockSpec((R, C), lambda n: (n, 0))
    out_spec = pl.BlockSpec((R, C), lambda n: (n, 0))
    out_shape = jax.ShapeDtypeStruct((N * L, C), x_lnc.dtype)

    in_specs = [x_spec] + [const_spec(a) for a in param_list]

    out = pl.pallas_call(
        kernel,
        grid=(N // Nb,),
        in_specs=in_specs,
        out_specs=out_spec,
        out_shape=out_shape,
        compiler_params=pltpu.CompilerParams(
            dimension_semantics=("parallel",),
            vmem_limit_bytes=vmem_limit,
        ),
    )(x_in, *param_list)

    return jnp.transpose(out.reshape(N, L, C), (1, 0, 2))


def init_params(key, d_model, n_head, mlp_ratio=4.0):
    C = d_model
    M = int(C * mlp_ratio)
    head_dim = C // n_head
    scale = head_dim ** (-0.5)
    ks = jax.random.split(key, 8)

    in_proj_w = jax.random.normal(ks[0], (3 * C, C), jnp.float32) * scale   # (3C, C)
    in_proj_b = jax.random.normal(ks[1], (3 * C,), jnp.float32) * 0.02
    out_w = jax.random.normal(ks[2], (C, C), jnp.float32) * 0.02            # (C, C)
    out_b = jax.random.normal(ks[3], (C,), jnp.float32) * 0.02
    fc_w = jax.random.normal(ks[4], (M, C), jnp.float32) * 0.02             # (M, C)
    fc_b = jax.random.normal(ks[5], (M,), jnp.float32) * 0.02
    proj_w = jax.random.normal(ks[6], (C, M), jnp.float32) * 0.02           # (C, M)
    proj_b = jax.random.normal(ks[7], (C,), jnp.float32) * 0.02

    ln1_w = jnp.ones((C,), jnp.float32) + 0.01 * jnp.arange(C, dtype=jnp.float32)
    ln1_b = 0.01 * jnp.arange(C, dtype=jnp.float32)
    ln2_w = jnp.ones((C,), jnp.float32) - 0.005 * jnp.arange(C, dtype=jnp.float32)
    ln2_b = -0.01 * jnp.arange(C, dtype=jnp.float32)

    return {
        "ln1_w": ln1_w.reshape(1, C), "ln1_b": ln1_b.reshape(1, C),
        "wqkv_t": in_proj_w.T, "bqkv": in_proj_b.reshape(1, 3 * C),
        "wout_t": out_w.T, "bout": out_b.reshape(1, C),
        "ln2_w": ln2_w.reshape(1, C), "ln2_b": ln2_b.reshape(1, C),
        "wfc_t": fc_w.T, "bfc": fc_b.reshape(1, M),
        "wproj_t": proj_w.T, "bproj": proj_b.reshape(1, C),
    }


def reference_block(x_lnc, params, num_heads):
    """Pure-JAX f32 reference mirroring the PyTorch forward exactly."""
    L, N, C = x_lnc.shape
    hd = C // num_heads
    scale = hd ** (-0.5)

    def ln(x, w, b):
        mu = jnp.mean(x, axis=-1, keepdims=True)
        var = jnp.mean((x - mu) ** 2, axis=-1, keepdims=True)
        return (x - mu) / jnp.sqrt(var + 1e-5) * w + b

    x = x_lnc
    y = ln(x, params["ln1_w"][0], params["ln1_b"][0])
    qkv = y @ params["wqkv_t"] + params["bqkv"][0]          # (L, N, 3C)
    q, k, v = jnp.split(qkv, 3, axis=-1)

    def to_heads(t):
        t = t.reshape(L, N * num_heads, hd)
        return jnp.transpose(t, (1, 0, 2))

    q, k, v = to_heads(q) * scale, to_heads(k), to_heads(v)
    attn = jax.nn.softmax(jnp.einsum("bld,bmd->blm", q, k), axis=-1)
    o = jnp.einsum("blm,bmd->bld", attn, v)                 # (N*H, L, hd)
    o = jnp.transpose(o, (1, 0, 2)).reshape(L, N, C)
    o = o @ params["wout_t"] + params["bout"][0]
    x = x + o

    z = ln(x, params["ln2_w"][0], params["ln2_b"][0])
    h = z @ params["wfc_t"] + params["bfc"][0]
    h = 0.5 * h * (1.0 + lax.erf(h / math.sqrt(2.0)))
    m = h @ params["wproj_t"] + params["bproj"][0]
    return x + m


if __name__ == "__main__":
    # seq=8, batch=2, d_model=128, heads=2 (head_dim=64, mlp_width=512)
    L, N, C, H = 8, 2, 128, 2

    key = jax.random.PRNGKey(0)
    kx, kp = jax.random.split(key)
    x = jax.random.normal(kx, (L, N, C), jnp.float32)
    params = init_params(kp, C, H, mlp_ratio=4.0)

    out = custom_residual_attention_block(x, params, H)
    out = jax.block_until_ready(out)

    ref = reference_block(x, params, H)
    assert out.shape == (L, N, C)
    # bf16 MXU operands (f32 accumulation) => slightly looser tolerance vs f32 ref.
    assert jnp.allclose(out, ref, atol=5e-2, rtol=5e-2), "mismatch vs reference"

    print("KERNEL_OK")
</pallas_src>

<mosaic_0001>
module attributes {stable_mosaic.version = 11 : i64} {
  func.func @kernel(%arg0: i32, %arg1: memref<16x128xf32, #tpu.memory_space<vmem>>, %arg2: memref<1x128xf32, #tpu.memory_space<vmem>>, %arg3: memref<1x128xf32, #tpu.memory_space<vmem>>, %arg4: memref<128x384xbf16, #tpu.memory_space<vmem>>, %arg5: memref<1x384xf32, #tpu.memory_space<vmem>>, %arg6: memref<128x128xbf16, #tpu.memory_space<vmem>>, %arg7: memref<1x128xf32, #tpu.memory_space<vmem>>, %arg8: memref<1x128xf32, #tpu.memory_space<vmem>>, %arg9: memref<1x128xf32, #tpu.memory_space<vmem>>, %arg10: memref<128x512xbf16, #tpu.memory_space<vmem>>, %arg11: memref<1x512xf32, #tpu.memory_space<vmem>>, %arg12: memref<512x128xbf16, #tpu.memory_space<vmem>>, %arg13: memref<1x128xf32, #tpu.memory_space<vmem>>, %arg14: memref<16x128xf32, #tpu.memory_space<vmem>>) attributes {dimension_semantics = [#tpu.dimension_semantics<parallel>], iteration_bounds = array<i64: 1>, scalar_prefetch = 0 : i64, scratch_operands = 0 : i64, tpu.core_type = #tpu.core_type<tc>, window_params = [{transform_indices = @transform_0, window_bounds = array<i64: 16, 128>}, {pipeline_mode = #tpu.pipeline_mode<synchronous>, transform_indices = @transform_1, window_bounds = array<i64: 1, 128>}, {pipeline_mode = #tpu.pipeline_mode<synchronous>, transform_indices = @transform_2, window_bounds = array<i64: 1, 128>}, {pipeline_mode = #tpu.pipeline_mode<synchronous>, transform_indices = @transform_3, window_bounds = array<i64: 128, 384>}, {pipeline_mode = #tpu.pipeline_mode<synchronous>, transform_indices = @transform_4, window_bounds = array<i64: 1, 384>}, {pipeline_mode = #tpu.pipeline_mode<synchronous>, transform_indices = @transform_5, window_bounds = array<i64: 128, 128>}, {pipeline_mode = #tpu.pipeline_mode<synchronous>, transform_indices = @transform_6, window_bounds = array<i64: 1, 128>}, {pipeline_mode = #tpu.pipeline_mode<synchronous>, transform_indices = @transform_7, window_bounds = array<i64: 1, 128>}, {pipeline_mode = #tpu.pipeline_mode<synchronous>, transform_indices = @transform_8, window_bounds = array<i64: 1, 128>}, {pipeline_mode = #tpu.pipeline_mode<synchronous>, transform_indices = @transform_9, window_bounds = array<i64: 128, 512>}, {pipeline_mode = #tpu.pipeline_mode<synchronous>, transform_indices = @transform_10, window_bounds = array<i64: 1, 512>}, {pipeline_mode = #tpu.pipeline_mode<synchronous>, transform_indices = @transform_11, window_bounds = array<i64: 512, 128>}, {pipeline_mode = #tpu.pipeline_mode<synchronous>, transform_indices = @transform_12, window_bounds = array<i64: 1, 128>}, {transform_indices = @transform_13, window_bounds = array<i64: 16, 128>}]} {
    %c0 = arith.constant 0 : index
    %c0_0 = arith.constant 0 : index
    %0 = vector.load %arg1[%c0, %c0_0] : memref<16x128xf32, #tpu.memory_space<vmem>>, vector<16x128xf32>
    %c0_1 = arith.constant 0 : index
    %c0_2 = arith.constant 0 : index
    %1 = vector.load %arg2[%c0_1, %c0_2] : memref<1x128xf32, #tpu.memory_space<vmem>>, vector<1x128xf32>
    %c0_3 = arith.constant 0 : index
    %c0_4 = arith.constant 0 : index
    %2 = vector.load %arg3[%c0_3, %c0_4] : memref<1x128xf32, #tpu.memory_space<vmem>>, vector<1x128xf32>
    %cst = arith.constant dense<0.000000e+00> : vector<16xf32>
    %3 = vector.multi_reduction <add>, %0, %cst [1] : vector<16x128xf32> to vector<16xf32>
    %4 = vector.shape_cast %3 : vector<16xf32> to vector<16x1xf32>
    %cst_5 = arith.constant 1.280000e+02 : f32
    %5 = vector.broadcast %cst_5 : f32 to vector<16x1xf32>
    %6 = arith.divf %4, %5 : vector<16x1xf32>
    %7 = vector.broadcast %6 : vector<16x1xf32> to vector<16x128xf32>
    %8 = arith.subf %0, %7 : vector<16x128xf32>
    %9 = arith.mulf %8, %8 : vector<16x128xf32>
    %cst_6 = arith.constant dense<0.000000e+00> : vector<16xf32>
    %10 = vector.multi_reduction <add>, %9, %cst_6 [1] : vector<16x128xf32> to vector<16xf32>
    %11 = vector.shape_cast %10 : vector<16xf32> to vector<16x1xf32>
    %cst_7 = arith.constant 1.280000e+02 : f32
    %12 = vector.broadcast %cst_7 : f32 to vector<16x1xf32>
    %13 = arith.divf %11, %12 : vector<16x1xf32>
    %cst_8 = arith.constant 9.99999974E-6 : f32
    %14 = vector.broadcast %cst_8 : f32 to vector<16x1xf32>
    %15 = arith.addf %13, %14 : vector<16x1xf32>
    %16 = math.rsqrt %15 : vector<16x1xf32>
    %17 = vector.broadcast %16 : vector<16x1xf32> to vector<16x128xf32>
    %18 = arith.mulf %8, %17 : vector<16x128xf32>
    %19 = vector.broadcast %1 : vector<1x128xf32> to vector<16x128xf32>
    %20 = arith.mulf %18, %19 : vector<16x128xf32>
    %21 = vector.broadcast %2 : vector<1x128xf32> to vector<16x128xf32>
    %22 = arith.addf %20, %21 : vector<16x128xf32>
    %23 = arith.truncf %22 : vector<16x128xf32> to vector<16x128xbf16>
    %c0_9 = arith.constant 0 : index
    %c0_10 = arith.constant 0 : index
    %24 = vector.load %arg4[%c0_9, %c0_10] : memref<128x384xbf16, #tpu.memory_space<vmem>>, vector<128x384xbf16>
    %cst_11 = arith.constant dense<0.000000e+00> : vector<16x384xf32>
    %25 = tpu.matmul %23, %24, %cst_11 {dimension_numbers = #tpu.dot_dimension_numbers<[1], [0], [0], [1], [0, 0, 1, 1], [], []>} : vector<16x128xbf16>, vector<128x384xbf16>, vector<16x384xf32> -> vector<16x384xf32>
    %c0_12 = arith.constant 0 : index
    %c0_13 = arith.constant 0 : index
    %26 = vector.load %arg5[%c0_12, %c0_13] : memref<1x384xf32, #tpu.memory_space<vmem>>, vector<1x384xf32>
    %27 = vector.broadcast %26 : vector<1x384xf32> to vector<16x384xf32>
    %28 = arith.addf %25, %27 : vector<16x384xf32>
    %29 = arith.truncf %28 : vector<16x384xf32> to vector<16x384xbf16>
    %cst_14 = arith.constant 0.000000e+00 : f32
    %30 = vector.broadcast %cst_14 : f32 to vector<16x128xf32>
    %31 = vector.extract_strided_slice %29 {offsets = [0, 0], sizes = [16, 64], strides = [1, 1]} : vector<16x384xbf16> to vector<16x64xbf16>
    %32 = vector.shape_cast %31 : vector<16x64xbf16> to vector<2x8x64xbf16>
    %33 = vector.extract_strided_slice %29 {offsets = [0, 128], sizes = [16, 64], strides = [1, 1]} : vector<16x384xbf16> to vector<16x64xbf16>
    %34 = vector.shape_cast %33 : vector<16x64xbf16> to vector<2x8x64xbf16>
    %35 = vector.extract_strided_slice %29 {offsets = [0, 256], sizes = [16, 64], strides = [1, 1]} : vector<16x384xbf16> to vector<16x64xbf16>
    %36 = vector.shape_cast %35 : vector<16x64xbf16> to vector<2x8x64xbf16>
    "tpu.trace_start"() <{level = 10 : i32, message = "bld,bmd->blm"}> : () -> ()
    %cst_15 = arith.constant dense<0.000000e+00> : vector<2x8x8xf32>
    %37 = tpu.matmul %32, %34, %cst_15 {dimension_numbers = #tpu.dot_dimension_numbers<[2], [2], [1], [1], [0, 0, 0, 1, 1, 1], [0], [0]>} : vector<2x8x64xbf16>, vector<2x8x64xbf16>, vector<2x8x8xf32> -> vector<2x8x8xf32>
    "tpu.trace_stop"() : () -> ()
    %cst_16 = arith.constant dense<0xFF800000> : vector<2x8xf32>
    %38 = vector.multi_reduction <maximumf>, %37, %cst_16 [2] : vector<2x8x8xf32> to vector<2x8xf32>
    %39 = vector.shape_cast %38 : vector<2x8xf32> to vector<2x8x1xf32>
    %40 = vector.broadcast %39 : vector<2x8x1xf32> to vector<2x8x8xf32>
    %41 = arith.subf %37, %40 : vector<2x8x8xf32>
    %42 = math.exp %41 : vector<2x8x8xf32>
    %cst_17 = arith.constant dense<0.000000e+00> : vector<2x8xf32>
    %43 = vector.multi_reduction <add>, %42, %cst_17 [2] : vector<2x8x8xf32> to vector<2x8xf32>
    %44 = vector.shape_cast %43 : vector<2x8xf32> to vector<2x8x1xf32>
    %45 = tpu.reciprocal %44 {approx = true} : vector<2x8x1xf32> -> vector<2x8x1xf32>
    %46 = vector.broadcast %45 : vector<2x8x1xf32> to vector<2x8x8xf32>
    %47 = arith.mulf %42, %46 : vector<2x8x8xf32>
    %48 = arith.truncf %47 : vector<2x8x8xf32> to vector<2x8x8xbf16>
    "tpu.trace_start"() <{level = 10 : i32, message = "blm,bmd->bld"}> : () -> ()
    %cst_18 = arith.constant dense<0.000000e+00> : vector<2x8x64xf32>
    %49 = tpu.matmul %48, %36, %cst_18 {dimension_numbers = #tpu.dot_dimension_numbers<[2], [1], [1], [2], [0, 0, 0, 1, 1, 2], [0], [0]>} : vector<2x8x8xbf16>, vector<2x8x64xbf16>, vector<2x8x64xf32> -> vector<2x8x64xf32>
    "tpu.trace_stop"() : () -> ()
    %50 = arith.truncf %49 : vector<2x8x64xf32> to vector<2x8x64xbf16>
    %51 = vector.shape_cast %50 : vector<2x8x64xbf16> to vector<16x64xbf16>
    %52 = vector.extract_strided_slice %29 {offsets = [0, 64], sizes = [16, 64], strides = [1, 1]} : vector<16x384xbf16> to vector<16x64xbf16>
    %53 = vector.shape_cast %52 : vector<16x64xbf16> to vector<2x8x64xbf16>
    %54 = vector.extract_strided_slice %29 {offsets = [0, 192], sizes = [16, 64], strides = [1, 1]} : vector<16x384xbf16> to vector<16x64xbf16>
    %55 = vector.shape_cast %54 : vector<16x64xbf16> to vector<2x8x64xbf16>
    %56 = vector.extract_strided_slice %29 {offsets = [0, 320], sizes = [16, 64], strides = [1, 1]} : vector<16x384xbf16> to vector<16x64xbf16>
    %57 = vector.shape_cast %56 : vector<16x64xbf16> to vector<2x8x64xbf16>
    "tpu.trace_start"() <{level = 10 : i32, message = "bld,bmd->blm"}> : () -> ()
    %cst_19 = arith.constant dense<0.000000e+00> : vector<2x8x8xf32>
    %58 = tpu.matmul %53, %55, %cst_19 {dimension_numbers = #tpu.dot_dimension_numbers<[2], [2], [1], [1], [0, 0, 0, 1, 1, 1], [0], [0]>} : vector<2x8x64xbf16>, vector<2x8x64xbf16>, vector<2x8x8xf32> -> vector<2x8x8xf32>
    "tpu.trace_stop"() : () -> ()
    %cst_20 = arith.constant dense<0xFF800000> : vector<2x8xf32>
    %59 = vector.multi_reduction <maximumf>, %58, %cst_20 [2] : vector<2x8x8xf32> to vector<2x8xf32>
    %60 = vector.shape_cast %59 : vector<2x8xf32> to vector<2x8x1xf32>
    %61 = vector.broadcast %60 : vector<2x8x1xf32> to vector<2x8x8xf32>
    %62 = arith.subf %58, %61 : vector<2x8x8xf32>
    %63 = math.exp %62 : vector<2x8x8xf32>
    %cst_21 = arith.constant dense<0.000000e+00> : vector<2x8xf32>
    %64 = vector.multi_reduction <add>, %63, %cst_21 [2] : vector<2x8x8xf32> to vector<2x8xf32>
    %65 = vector.shape_cast %64 : vector<2x8xf32> to vector<2x8x1xf32>
    %66 = tpu.reciprocal %65 {approx = true} : vector<2x8x1xf32> -> vector<2x8x1xf32>
    %67 = vector.broadcast %66 : vector<2x8x1xf32> to vector<2x8x8xf32>
    %68 = arith.mulf %63, %67 : vector<2x8x8xf32>
    %69 = arith.truncf %68 : vector<2x8x8xf32> to vector<2x8x8xbf16>
    "tpu.trace_start"() <{level = 10 : i32, message = "blm,bmd->bld"}> : () -> ()
    %cst_22 = arith.constant dense<0.000000e+00> : vector<2x8x64xf32>
    %70 = tpu.matmul %69, %57, %cst_22 {dimension_numbers = #tpu.dot_dimension_numbers<[2], [1], [1], [2], [0, 0, 0, 1, 1, 2], [0], [0]>} : vector<2x8x8xbf16>, vector<2x8x64xbf16>, vector<2x8x64xf32> -> vector<2x8x64xf32>
    "tpu.trace_stop"() : () -> ()
    %71 = arith.truncf %70 : vector<2x8x64xf32> to vector<2x8x64xbf16>
    %72 = vector.shape_cast %71 : vector<2x8x64xbf16> to vector<16x64xbf16>
    %73 = tpu.concatenate %51, %72 in 1 : vector<16x64xbf16>, vector<16x64xbf16> -> vector<16x128xbf16>
    %c0_23 = arith.constant 0 : index
    %c0_24 = arith.constant 0 : index
    %74 = vector.load %arg6[%c0_23, %c0_24] : memref<128x128xbf16, #tpu.memory_space<vmem>>, vector<128x128xbf16>
    %cst_25 = arith.constant dense<0.000000e+00> : vector<16x128xf32>
    %75 = tpu.matmul %73, %74, %cst_25 {dimension_numbers = #tpu.dot_dimension_numbers<[1], [0], [0], [1], [0, 0, 1, 1], [], []>} : vector<16x128xbf16>, vector<128x128xbf16>, vector<16x128xf32> -> vector<16x128xf32>
    %76 = arith.addf %30, %75 : vector<16x128xf32>
    %77 = arith.addf %0, %76 : vector<16x128xf32>
    %c0_26 = arith.constant 0 : index
    %c0_27 = arith.constant 0 : index
    %78 = vector.load %arg7[%c0_26, %c0_27] : memref<1x128xf32, #tpu.memory_space<vmem>>, vector<1x128xf32>
    %79 = vector.broadcast %78 : vector<1x128xf32> to vector<16x128xf32>
    %80 = arith.addf %77, %79 : vector<16x128xf32>
    %c0_28 = arith.constant 0 : index
    %c0_29 = arith.constant 0 : index
    %81 = vector.load %arg8[%c0_28, %c0_29] : memref<1x128xf32, #tpu.memory_space<vmem>>, vector<1x128xf32>
    %c0_30 = arith.constant 0 : index
    %c0_31 = arith.constant 0 : index
    %82 = vector.load %arg9[%c0_30, %c0_31] : memref<1x128xf32, #tpu.memory_space<vmem>>, vector<1x128xf32>
    %cst_32 = arith.constant dense<0.000000e+00> : vector<16xf32>
    %83 = vector.multi_reduction <add>, %80, %cst_32 [1] : vector<16x128xf32> to vector<16xf32>
    %84 = vector.shape_cast %83 : vector<16xf32> to vector<16x1xf32>
    %cst_33 = arith.constant 1.280000e+02 : f32
    %85 = vector.broadcast %cst_33 : f32 to vector<16x1xf32>
    %86 = arith.divf %84, %85 : vector<16x1xf32>
    %87 = vector.broadcast %86 : vector<16x1xf32> to vector<16x128xf32>
    %88 = arith.subf %80, %87 : vector<16x128xf32>
    %89 = arith.mulf %88, %88 : vector<16x128xf32>
    %cst_34 = arith.constant dense<0.000000e+00> : vector<16xf32>
    %90 = vector.multi_reduction <add>, %89, %cst_34 [1] : vector<16x128xf32> to vector<16xf32>
    %91 = vector.shape_cast %90 : vector<16xf32> to vector<16x1xf32>
    %cst_35 = arith.constant 1.280000e+02 : f32
    %92 = vector.broadcast %cst_35 : f32 to vector<16x1xf32>
    %93 = arith.divf %91, %92 : vector<16x1xf32>
    %cst_36 = arith.constant 9.99999974E-6 : f32
    %94 = vector.broadcast %cst_36 : f32 to vector<16x1xf32>
    %95 = arith.addf %93, %94 : vector<16x1xf32>
    %96 = math.rsqrt %95 : vector<16x1xf32>
    %97 = vector.broadcast %96 : vector<16x1xf32> to vector<16x128xf32>
    %98 = arith.mulf %88, %97 : vector<16x128xf32>
    %99 = vector.broadcast %81 : vector<1x128xf32> to vector<16x128xf32>
    %100 = arith.mulf %98, %99 : vector<16x128xf32>
    %101 = vector.broadcast %82 : vector<1x128xf32> to vector<16x128xf32>
    %102 = arith.addf %100, %101 : vector<16x128xf32>
    %103 = arith.truncf %102 : vector<16x128xf32> to vector<16x128xbf16>
    %cst_37 = arith.constant 0.000000e+00 : f32
    %104 = vector.broadcast %cst_37 : f32 to vector<16x128xf32>
    %c0_38 = arith.constant 0 : index
    %c0_39 = arith.constant 0 : index
    %105 = vector.load %arg10[%c0_38, %c0_39] : memref<128x512xbf16, #tpu.memory_space<vmem>>, vector<128x512xbf16>
    %cst_40 = arith.constant dense<0.000000e+00> : vector<16x512xf32>
    %106 = tpu.matmul %103, %105, %cst_40 {dimension_numbers = #tpu.dot_dimension_numbers<[1], [0], [0], [1], [0, 0, 1, 1], [], []>} : vector<16x128xbf16>, vector<128x512xbf16>, vector<16x512xf32> -> vector<16x512xf32>
    %c0_41 = arith.constant 0 : index
    %c0_42 = arith.constant 0 : index
    %107 = vector.load %arg11[%c0_41, %c0_42] : memref<1x512xf32, #tpu.memory_space<vmem>>, vector<1x512xf32>
    %108 = vector.broadcast %107 : vector<1x512xf32> to vector<16x512xf32>
    %109 = arith.addf %106, %108 : vector<16x512xf32>
    %cst_43 = arith.constant 5.000000e-01 : f32
    %110 = vector.broadcast %cst_43 : f32 to vector<16x512xf32>
    %111 = arith.mulf %110, %109 : vector<16x512xf32>
    %cst_44 = arith.constant 0.707106769 : f32
    %112 = vector.broadcast %cst_44 : f32 to vector<16x512xf32>
    %113 = arith.mulf %109, %112 : vector<16x512xf32>
    %114 = math.erf %113 : vector<16x512xf32>
    %cst_45 = arith.constant 1.000000e+00 : f32
    %115 = vector.broadcast %cst_45 : f32 to vector<16x512xf32>
    %116 = arith.addf %115, %114 : vector<16x512xf32>
    %117 = arith.mulf %111, %116 : vector<16x512xf32>
    %118 = arith.truncf %117 : vector<16x512xf32> to vector<16x512xbf16>
    %c0_46 = arith.constant 0 : index
    %c0_47 = arith.constant 0 : index
    %119 = vector.load %arg12[%c0_46, %c0_47] : memref<512x128xbf16, #tpu.memory_space<vmem>>, vector<512x128xbf16>
    %cst_48 = arith.constant dense<0.000000e+00> : vector<16x128xf32>
    %120 = tpu.matmul %118, %119, %cst_48 {dimension_numbers = #tpu.dot_dimension_numbers<[1], [0], [0], [1], [0, 0, 1, 1], [], []>} : vector<16x512xbf16>, vector<512x128xbf16>, vector<16x128xf32> -> vector<16x128xf32>
    %121 = arith.addf %104, %120 : vector<16x128xf32>
    %122 = arith.addf %80, %121 : vector<16x128xf32>
    %c0_49 = arith.constant 0 : index
    %c0_50 = arith.constant 0 : index
    %123 = vector.load %arg13[%c0_49, %c0_50] : memref<1x128xf32, #tpu.memory_space<vmem>>, vector<1x128xf32>
    %124 = vector.broadcast %123 : vector<1x128xf32> to vector<16x128xf32>
    %125 = arith.addf %122, %124 : vector<16x128xf32>
    %c0_51 = arith.constant 0 : index
    %c0_52 = arith.constant 0 : index
    %126 = vector.load %arg14[%c0_51, %c0_52] : memref<16x128xf32, #tpu.memory_space<vmem>>, vector<16x128xf32>
    tpu.vector_store %arg14[%c0_51, %c0_52], %125 {strides = array<i32>} : memref<16x128xf32, #tpu.memory_space<vmem>>, vector<16x128xf32>,
    return
  }
  func.func @transform_0(%arg0: i32) -> (i32, i32) {
    %c0_i32 = arith.constant 0 : i32
    %c0_i32_0 = arith.constant 0 : i32
    return %arg0, %c0_i32 : i32, i32
  }
  func.func @transform_1(%arg0: i32) -> (i32, i32) {
    %c0_i32 = arith.constant 0 : i32
    %c0_i32_0 = arith.constant 0 : i32
    %c0_i32_1 = arith.constant 0 : i32
    return %c0_i32, %c0_i32_0 : i32, i32
  }
  func.func @transform_2(%arg0: i32) -> (i32, i32) {
    %c0_i32 = arith.constant 0 : i32
    %c0_i32_0 = arith.constant 0 : i32
    %c0_i32_1 = arith.constant 0 : i32
    return %c0_i32, %c0_i32_0 : i32, i32
  }
  func.func @transform_3(%arg0: i32) -> (i32, i32) {
    %c0_i32 = arith.constant 0 : i32
    %c0_i32_0 = arith.constant 0 : i32
    %c0_i32_1 = arith.constant 0 : i32
    return %c0_i32, %c0_i32_0 : i32, i32
  }
  func.func @transform_4(%arg0: i32) -> (i32, i32) {
    %c0_i32 = arith.constant 0 : i32
    %c0_i32_0 = arith.constant 0 : i32
    %c0_i32_1 = arith.constant 0 : i32
    return %c0_i32, %c0_i32_0 : i32, i32
  }
  func.func @transform_5(%arg0: i32) -> (i32, i32) {
    %c0_i32 = arith.constant 0 : i32
    %c0_i32_0 = arith.constant 0 : i32
    %c0_i32_1 = arith.constant 0 : i32
    return %c0_i32, %c0_i32_0 : i32, i32
  }
  func.func @transform_6(%arg0: i32) -> (i32, i32) {
    %c0_i32 = arith.constant 0 : i32
    %c0_i32_0 = arith.constant 0 : i32
    %c0_i32_1 = arith.constant 0 : i32
    return %c0_i32, %c0_i32_0 : i32, i32
  }
  func.func @transform_7(%arg0: i32) -> (i32, i32) {
    %c0_i32 = arith.constant 0 : i32
    %c0_i32_0 = arith.constant 0 : i32
    %c0_i32_1 = arith.constant 0 : i32
    return %c0_i32, %c0_i32_0 : i32, i32
  }
  func.func @transform_8(%arg0: i32) -> (i32, i32) {
    %c0_i32 = arith.constant 0 : i32
    %c0_i32_0 = arith.constant 0 : i32
    %c0_i32_1 = arith.constant 0 : i32
    return %c0_i32, %c0_i32_0 : i32, i32
  }
  func.func @transform_9(%arg0: i32) -> (i32, i32) {
    %c0_i32 = arith.constant 0 : i32
    %c0_i32_0 = arith.constant 0 : i32
    %c0_i32_1 = arith.constant 0 : i32
    return %c0_i32, %c0_i32_0 : i32, i32
  }
  func.func @transform_10(%arg0: i32) -> (i32, i32) {
    %c0_i32 = arith.constant 0 : i32
    %c0_i32_0 = arith.constant 0 : i32
    %c0_i32_1 = arith.constant 0 : i32
    return %c0_i32, %c0_i32_0 : i32, i32
  }
  func.func @transform_11(%arg0: i32) -> (i32, i32) {
    %c0_i32 = arith.constant 0 : i32
    %c0_i32_0 = arith.constant 0 : i32
    %c0_i32_1 = arith.constant 0 : i32
    return %c0_i32, %c0_i32_0 : i32, i32
  }
  func.func @transform_12(%arg0: i32) -> (i32, i32) {
    %c0_i32 = arith.constant 0 : i32
    %c0_i32_0 = arith.constant 0 : i32
    %c0_i32_1 = arith.constant 0 : i32
    return %c0_i32, %c0_i32_0 : i32, i32
  }
  func.func @transform_13(%arg0: i32) -> (i32, i32) {
    %c0_i32 = arith.constant 0 : i32
    %c0_i32_0 = arith.constant 0 : i32
    return %arg0, %c0_i32 : i32, i32
  }
}

</mosaic_0001>

<bundles_post_ra>
// kernel: tpu_custom_call.1
= control target key start
LH: loop header
LB: loop body
LE: loop exit
PB: predicated region body
PF: predicated region fallthrough
CT: control target
= control target key end

     0   :  { %18 = vsyncpa [#allocation3], 0  ;;  %s2821_s0 = inlined_call_operand.hbm [shape: f32[16,128], index: 0, kind: input, shape index: {}]   ;;  %s2822_s1 = inlined_call_operand.hbm [shape: f32[1,128], index: 1, kind: input, shape index: {}]   ;;  %s2823_s2 = inlined_call_operand.hbm [shape: f32[1,128], index: 2, kind: input, shape index: {}]   ;;  %s2824_s3 = inlined_call_operand.hbm [shape: bf16[128,384], index: 3, kind: input, shape index: {}]   ;;  %s2825_s4 = inlined_call_operand.vmem [shape: f32[1,384], index: 4, kind: input, shape index: {}]   ;;  %s2826_s5 = inlined_call_operand.hbm [shape: bf16[128,128], index: 5, kind: input, shape index: {}]   ;;  %s2827_s6 = inlined_call_operand.vmem [shape: f32[1,128], index: 6, kind: input, shape index: {}]   ;;  %s2828_s7 = inlined_call_operand.vmem [shape: f32[1,128], index: 7, kind: input, shape index: {}]   ;;  %s2829_s8 = inlined_call_operand.vmem [shape: f32[1,128], index: 8, kind: input, shape index: {}]   ;;  %s2830_s9 = inlined_call_operand.hbm [shape: bf16[128,512], index: 9, kind: input, shape index: {}]   ;;  %s2831_s10 = inlined_call_operand.vmem [shape: f32[1,512], index: 10, kind: input, shape index: {}]   ;;  %s2832_s11 = inlined_call_operand.hbm [shape: bf16[512,128], index: 11, kind: input, shape index: {}]   ;;  %s2833_s12 = inlined_call_operand.vmem [shape: f32[1,128], index: 12, kind: input, shape index: {}]   ;;  %s2834_s13 = inlined_call_operand.hbm [shape: f32[16,128], index: 13, kind: output, shape index: {}]  }
   0x1   :  { %19 = vsyncpa [#allocation6], 0 }
   0x2   :  { %20 = vsyncpa [#allocation9], 0 }
   0x3   :  { %21 = vsyncpa [#allocation12], 0 }
   0x4   :  { %22 = vsyncpa [#allocation4], 0  ;;  %s2440_s25 = smov [#allocation5]   ;;  %s2441_s27 = smov [#allocation8]  }
   0x5   :  { %s41_s26 = sshll.u32 %s2440_s25, 4  ;;  %s60_s28 = sshll.u32 %s2441_s27, 4  ;;  %s42_s26 = int_to_ptr.vmem [resolvable:$true] %s41_s26  ;;  %s2529_s28 = int_to_ptr.vmem [resolvable:$true] %s60_s28 }
   0x6   :  { %s2254_s14 = scalar_lea.hbm %s2822_s1, 16 }
   0x7   :  { %p2255_p0 = scmp.ne.s32.totalorder %s2822_s1, %s2254_s14  ;;  %p2258_p1 = scmp.lt.u32.totalorder %s2254_s14, %s2822_s1 }
   0x9   :  { %p2260_p2 = pnand %p2258_p1, %p2255_p0 }
   0xb   :  { %2263 = shalt.err (!%p2260_p2)
}
   0xc   :  { %s2264_s19 = scalar_lea.vmem %s42_s26, 16  ;;  %s2268_s20 = scalar_lea.vmem %s42_s26, 32 }
   0xd   :  { %p2265_p3 = scmp.ne.s32.totalorder %s42_s26, %s2264_s19  ;;  %p2269_p4 = scmp.lt.s32.totalorder %s42_s26, %s42_s26 }
   0xe   :  { %p2270_p5 = scmp.lt.s32.totalorder %s2268_s20, %s2264_s19 }
  0x10   :  { %p2271_p6 = por %p2270_p5, %p2269_p4 }
  0x12   :  { %p2272_p7 = pnand %p2271_p6, %p2265_p3 }
  0x14   :  { %2275 = shalt.err (!%p2272_p7)
}
  0x15   :  { %44 = dma.hbm_to_vmem [thread:$0]  %s2822_s1, 16, %s42_s26, [#allocation6]  }
  0x16   :  { %s2276_s25 = scalar_lea.hbm %s2824_s3, 3072 }
  0x17   :  { %p2277_p8 = scmp.ne.s32.totalorder %s2824_s3, %s2276_s25  ;;  %p2280_p9 = scmp.lt.u32.totalorder %s2276_s25, %s2824_s3 }
  0x19   :  { %p2282_p10 = pnand %p2280_p9, %p2277_p8 }
  0x1b   :  { %2285 = shalt.err (!%p2282_p10)
}
  0x1c   :  { %s2286_s15 = scalar_lea.vmem %s2529_s28, 3072  ;;  %p2291_p12 = scmp.lt.s32.totalorder %s2529_s28, %s2529_s28 }
  0x1d   :  { %p2287_p11 = scmp.ne.s32.totalorder %s2529_s28, %s2286_s15  ;;  %p2292_p13 = scmp.lt.s32.totalorder %s2286_s15, %s2286_s15 }
  0x1f   :  { %p2293_p0 = por %p2292_p13, %p2291_p12 }
  0x21   :  { %p2294_p1 = pnand %p2293_p0, %p2287_p11 }
  0x23   :  { %2297 = shalt.err (!%p2294_p1)
}
  0x24   :  { %s2442_s1 = smov 192   ;;  %s2443_s26 = smov 12  }
  0x25   :  { %66 = dma.hbm_to_vmem [thread:$0]  %s2824_s3, 3072, %s2529_s28, [#allocation9], %s2442_s1, %s2442_s1, %s2443_s26  }
  0x26   :  { %s2444_s18 = smov [#allocation11]   ;;  %s2298_s22 = scalar_lea.hbm %s2830_s9, 4096 }
  0x27   :  { %s92_s19 = sshll.u32 %s2444_s18, 4  ;;  %p2299_p2 = scmp.ne.s32.totalorder %s2830_s9, %s2298_s22  ;;  %s93_s19 = int_to_ptr.vmem [resolvable:$true] %s92_s19 }
  0x28   :  { %p2302_p3 = scmp.lt.u32.totalorder %s2298_s22, %s2830_s9 }
  0x2a   :  { %p2304_p4 = pnand %p2302_p3, %p2299_p2 }
  0x2c   :  { %2307 = shalt.err (!%p2304_p4)
}
  0x2d   :  { %s2308_s29 = scalar_lea.vmem %s93_s19, 4096  ;;  %p2313_p6 = scmp.lt.s32.totalorder %s93_s19, %s93_s19 }
  0x2e   :  { %p2309_p5 = scmp.ne.s32.totalorder %s93_s19, %s2308_s29  ;;  %p2314_p7 = scmp.lt.s32.totalorder %s2308_s29, %s2308_s29 }
  0x30   :  { %p2315_p8 = por %p2314_p7, %p2313_p6 }
  0x32   :  { %p2316_p9 = pnand %p2315_p8, %p2309_p5 }
  0x34   :  { %2319 = shalt.err (!%p2316_p9)
}
  0x35   :  { %s2445_s3 = smov 256   ;;  %s2446_s28 = smov 16  }
  0x36   :  { %98 = dma.hbm_to_vmem [thread:$0]  %s2830_s9, 4096, %s93_s19, [#allocation12], %s2445_s3, %s2445_s3, %s2446_s28  }
  0x37   :  { %s2447_s15 = smov [#allocation2]   ;;  %s2320_s17 = scalar_lea.hbm %s2821_s0, 256 }
  0x38   :  { %s28_s1 = sshll.u32 %s2447_s15, 4  ;;  %p2321_p10 = scmp.ne.s32.totalorder %s2821_s0, %s2320_s17  ;;  %s29_s1 = int_to_ptr.vmem [resolvable:$true] %s28_s1 }
  0x39   :  { %p2324_p11 = scmp.lt.u32.totalorder %s2320_s17, %s2821_s0 }
  0x3b   :  { %p2326_p12 = pnand %p2324_p11, %p2321_p10 }
  0x3d   :  { %2329 = shalt.err (!%p2326_p12)
}
  0x3e   :  { %s2330_s23 = scalar_lea.vmem %s29_s1, 256  ;;  %p2335_p0 = scmp.lt.s32.totalorder %s29_s1, %s29_s1 }
  0x3f   :  { %p2331_p13 = scmp.ne.s32.totalorder %s29_s1, %s2330_s23  ;;  %p2336_p1 = scmp.lt.s32.totalorder %s2330_s23, %s2330_s23 }
  0x41   :  { %p2337_p2 = por %p2336_p1, %p2335_p0 }
  0x43   :  { %p2338_p3 = pnand %p2337_p2, %p2331_p13 }
  0x45   :  { %2341 = shalt.err (!%p2338_p3)
}
  0x46   :  { %s2448_s9 = smov 128   ;;  %s2449_s19 = smov 8  }
  0x47   :  { %34 = dma.hbm_to_vmem [thread:$0]  %s2821_s0, 256, %s29_s1, [#allocation3], %s2448_s9, %s2448_s9, %s2449_s19  }
  0x48   :  { %s2450_s27 = smov [#allocation7]   ;;  %s2451_s3 = smov [#allocation10]  }
  0x49   :  { %s51_s29 = sshll.u32 %s2450_s27, 4  ;;  %s74_s28 = sshll.u32 %s2451_s3, 4  ;;  %s52_s29 = int_to_ptr.vmem [resolvable:$true] %s51_s29  ;;  %s2587_s28 = int_to_ptr.vmem [resolvable:$true] %s74_s28 }
  0x4a   :  { %s2342_s15 = scalar_lea.hbm %s2823_s2, 16 }
  0x4b   :  { %p2343_p4 = scmp.ne.s32.totalorder %s2823_s2, %s2342_s15  ;;  %p2346_p5 = scmp.lt.u32.totalorder %s2342_s15, %s2823_s2 }
  0x4d   :  { %p2348_p6 = pnand %p2346_p5, %p2343_p4 }
  0x4f   :  { %2351 = shalt.err (!%p2348_p6)
}
  0x50   :  { %s2352_s0 = scalar_lea.vmem %s52_s29, 16  ;;  %s2356_s1 = scalar_lea.vmem %s52_s29, 32 }
  0x51   :  { %p2353_p7 = scmp.ne.s32.totalorder %s52_s29, %s2352_s0  ;;  %p2357_p8 = scmp.lt.s32.totalorder %s52_s29, %s52_s29 }
  0x52   :  { %p2358_p9 = scmp.lt.s32.totalorder %s2356_s1, %s2352_s0 }
  0x54   :  { %p2359_p10 = por %p2358_p9, %p2357_p8 }
  0x56   :  { %p2360_p11 = pnand %p2359_p10, %p2353_p7 }
  0x58   :  { %2363 = shalt.err (!%p2360_p11)
}
  0x59   :  { %54 = dma.hbm_to_vmem [thread:$0]  %s2823_s2, 16, %s52_s29, [#allocation6]  }
  0x5a   :  { %s2364_s24 = scalar_lea.hbm %s2826_s5, 1024 }
  0x5b   :  { %p2365_p12 = scmp.ne.s32.totalorder %s2826_s5, %s2364_s24  ;;  %p2368_p13 = scmp.lt.u32.totalorder %s2364_s24, %s2826_s5 }
  0x5d   :  { %p2370_p0 = pnand %p2368_p13, %p2365_p12 }
  0x5f   :  { %2373 = shalt.err (!%p2370_p0)
}
  0x60   :  { %s2374_s14 = scalar_lea.vmem %s2587_s28, 1024  ;;  %p2379_p2 = scmp.lt.s32.totalorder %s2587_s28, %s2587_s28 }
  0x61   :  { %p2375_p1 = scmp.ne.s32.totalorder %s2587_s28, %s2374_s14  ;;  %p2380_p3 = scmp.lt.s32.totalorder %s2374_s14, %s2374_s14 }
  0x63   :  { %p2381_p4 = por %p2380_p3, %p2379_p2 }
  0x65   :  { %p2382_p5 = pnand %p2381_p4, %p2375_p1 }
  0x67   :  { %2385 = shalt.err (!%p2382_p5)
}
  0x68   :  { %s2452_s2 = smov 64   ;;  %s2453_s29 = smov 4  }
  0x69   :  { %80 = dma.hbm_to_vmem [thread:$0]  %s2826_s5, 1024, %s2587_s28, [#allocation9], %s2452_s2, %s2452_s2, %s2453_s29  }
  0x6a   :  { %s2454_s16 = smov [#allocation13]   ;;  %s2386_s1 = scalar_lea.hbm %s2832_s11, 4096 }
  0x6b   :  { %s106_s17 = sshll.u32 %s2454_s16, 4  ;;  %p2387_p6 = scmp.ne.s32.totalorder %s2832_s11, %s2386_s1  ;;  %s107_s17 = int_to_ptr.vmem [resolvable:$true] %s106_s17 }
  0x6c   :  { %p2390_p7 = scmp.lt.u32.totalorder %s2386_s1, %s2832_s11 }
  0x6e   :  { %p2392_p8 = pnand %p2390_p7, %p2387_p6 }
  0x70   :  { %2395 = shalt.err (!%p2392_p8)
}
  0x71   :  { %s2396_s24 = scalar_lea.vmem %s107_s17, 4096  ;;  %p2401_p10 = scmp.lt.s32.totalorder %s107_s17, %s107_s17 }
  0x72   :  { %p2397_p9 = scmp.ne.s32.totalorder %s107_s17, %s2396_s24  ;;  %p2402_p11 = scmp.lt.s32.totalorder %s2396_s24, %s2396_s24 }
  0x74   :  { %p2403_p12 = por %p2402_p11, %p2401_p10 }
  0x76   :  { %p2404_p13 = pnand %p2403_p12, %p2397_p9 }
  0x78   :  { %2407 = shalt.err (!%p2404_p13)
}
  0x79   :  { %112 = dma.hbm_to_vmem [thread:$0]  %s2832_s11, 4096, %s107_s17, [#allocation12], %s2452_s2, %s2452_s2, %s2453_s29  }
  0x7a   :  { %2430 = dma.done.wait [#allocation3], 256  }
  0x7b   :  { %2431 = vsyncadd [#allocation3], 4294967040 }
  0x7c   :  { %2432 = dma.done.wait [#allocation6], 32  }
  0x7d   :  { %2433 = vsyncadd [#allocation6], 4294967264 }
  0x7e   :  { %2434 = dma.done.wait [#allocation9], 4096  }
  0x7f   :  { %2435 = vsyncadd [#allocation9], 4294963200 }
  0x80   :  { %2436 = dma.done.wait [#allocation12], 8192  }
  0x81   :  { %2437 = vsyncadd [#allocation12], 4294959104  ;;  %v2634_v0 = vld [vmem:[#allocation2] sm:$0xff]  ;;  %v2636_v1 = vld [vmem:[#allocation2 + $0x8] sm:$0xff]  ;;  %v2455_v4 = vmov 0.0   ;;  %v2456_v30 = vmov 0   ;;  %v215_v53 = vlaneseq }
  0x82   :  { %141 = vadd.xlane.f32.xlu0 %v2634_v0  ;;  %v2094_v2 = vld [vmem:[#allocation8 + $0x4] ss:$12 sps:$4 sm:$0xff]   ;;  %v2096_v3 = vld [vmem:[#allocation8] ss:$12 sps:$4 sm:$0xff]   ;;  %1987 = vmatprep.subr.bf16.mxu1 %v2455_v4  ;;  %v2097_v5 = vld [vmem:[#allocation8 + $0x8] ss:$12 sps:$4 sm:$0xff]  }
  0x83   :  { %v2098_v6 = vld [vmem:[#allocation8 + $0x1c] ss:$12 sps:$4 sm:$0xff]   ;;  %358 = vmatprep.subr.bf16.mxu0 %v2094_v2  ;;  %1988 = vmatpush3.bf16.msra.mxu1 %v2097_v5  ;;  %v2100_v15 = vld [vmem:[#allocation8 + $0x18] ss:$12 sps:$4 sm:$0xff]   ;;  %v2101_v16 = vld [vmem:[#allocation8 + $0x20] ss:$12 sps:$4 sm:$0xff]  }
  0x84   :  { %359 = vmatpush1.bf16.msra.mxu0 %v2096_v3  ;;  %1989 = vmatprep.subr.bf16.mxu1 %v2455_v4  ;;  %v2102_v17 = vld [vmem:[#allocation8 + $0x34] ss:$12 sps:$4 sm:$0xff]   ;;  %v2104_v18 = vld [vmem:[#allocation8 + $0x30] ss:$12 sps:$4 sm:$0xff]   ;;  %v2105_v19 = vld [vmem:[#allocation8 + $0x38] ss:$12 sps:$4 sm:$0xff]  }
  0x85   :  { %360 = vmatprep.subr.bf16.mxu0 %v2098_v6  ;;  %v2106_v20 = vld [vmem:[#allocation8 + $0x4c] ss:$12 sps:$4 sm:$0xff]   ;;  %v2108_v21 = vld [vmem:[#allocation8 + $0x48] ss:$12 sps:$4 sm:$0xff]   ;;  %v2109_v22 = vld [vmem:[#allocation8 + $0x50] ss:$12 sps:$4 sm:$0xff]   ;;  %390 = vmatprep.mubr.bf16.mxu0 %v2456_v30 }
  0x86   :  { %143 = vadd.xlane.f32.xlu0 %v2636_v1  ;;  %v2110_v23 = vld [vmem:[#allocation8 + $0x64] ss:$12 sps:$4 sm:$0xff]   ;;  %v2112_v24 = vld [vmem:[#allocation8 + $0x60] ss:$12 sps:$4 sm:$0xff]   ;;  %v2113_v25 = vld [vmem:[#allocation8 + $0x68] ss:$12 sps:$4 sm:$0xff]  }
  0x87   :  { %1990 = vmatpush3.bf16.msra.mxu1 %v2101_v16  ;;  %v2114_v26 = vld [vmem:[#allocation8 + $0x7c] ss:$12 sps:$4 sm:$0xff]   ;;  %v2116_v27 = vld [vmem:[#allocation8 + $0x78] ss:$12 sps:$4 sm:$0xff]   ;;  %v2117_v28 = vld [vmem:[#allocation8 + $0x80] ss:$12 sps:$4 sm:$0xff]  }
  0x88   :  { %361 = vmatpush1.bf16.msra.mxu0 %v2100_v15  ;;  %1991 = vmatprep.subr.bf16.mxu1 %v2455_v4  ;;  %v2118_v29 = vld [vmem:[#allocation8 + $0x94] ss:$12 sps:$4 sm:$0xff]   ;;  %vm2457_vm0 = vmmov 0   ;;  %v2120_v31 = vld [vmem:[#allocation8 + $0x90] ss:$12 sps:$4 sm:$0xff]   ;;  %v2669_v54 = vshrl.u32 %v215_v53, 7 }
  0x89   :  { %362 = vmatprep.subr.bf16.mxu0 %v2102_v17  ;;  %2003 = vmatprep.mubr.msk.bf16.mxu1 %vm2457_vm0, %v2455_v4  ;;  %v2121_v32 = vld [vmem:[#allocation8 + $0x98] ss:$12 sps:$4 sm:$0xff]   ;;  %v2124_v34 = vld [vmem:[#allocation8 + $0xa8] ss:$12 sps:$4 sm:$0xff]   ;;  %v2125_v35 = vld [vmem:[#allocation8 + $0xb0] ss:$12 sps:$4 sm:$0xff]  }
  0x8a   :  { %v2122_v33 = vld [vmem:[#allocation8 + $0xac] ss:$12 sps:$4 sm:$0xff]   ;;  %v1783_v44 = vld [vmem:[#allocation5] ss:$0 sm:$0xff]  ;;  %v1784_v48 = vld [vmem:[#allocation7] ss:$0 sm:$0xff] }
  0x8b   :  { %1992 = vmatpush3.bf16.msra.mxu1 %v2105_v19  ;;  %v221_v55 = vsub.s32 1, %v2669_v54  ;;  %v213_v56 = vld [vmem:[%s2825_s4] sm:$0x7]  ;;  %v225_v57 = vsub.s32 2, %v2669_v54  ;;  %v217_v59 = vsub.s32 0, %v2669_v54  ;;  %vm460_vm1 = vcmask 523264  }
  0x8c   :  { %363 = vmatpush1.bf16.msra.mxu0 %v2104_v18  ;;  %1993 = vmatprep.subr.bf16.mxu1 %v2455_v4  ;;  %vm581_vm2 = vcmask 1043456   ;;  %vm553_vm3 = vcmask 64512   ;;  %s2458_s29 = smov [#allocation14]  }
  0x8d   :  { %364 = vmatprep.subr.bf16.mxu0 %v2106_v20  ;;  %v222_v58 = vrot.slane %v213_v56, %v221_v55  ;;  %v226_v62 = vrot.slane %v213_v56, %v225_v57  ;;  %s1768_s15 = sshll.u32 %s2458_s29, 4  ;;  %s1769_s15 = int_to_ptr.vmem [resolvable:$true] %s1768_s15 }
  0x8e   :  { %s2408_s26 = scalar_lea.vmem %s1769_s15, 256  ;;  %p2413_p1 = scmp.lt.s32.totalorder %s1769_s15, %s1769_s15 }
  0x8f   :  { %1994 = vmatpush3.bf16.msra.mxu1 %v2109_v22  ;;  %p2409_p0 = scmp.ne.s32.totalorder %s1769_s15, %s2408_s26  ;;  %p2414_p2 = scmp.lt.s32.totalorder %s2408_s26, %s2408_s26 }
  0x90   :  { %365 = vmatpush1.bf16.msra.mxu0 %v2108_v21  ;;  %1995 = vmatprep.subr.bf16.mxu1 %v2455_v4 }
  0x91   :  { %366 = vmatprep.subr.bf16.mxu0 %v2110_v23  ;;  %p2415_p3 = por %p2414_p2, %p2413_p1 }
  0x93   :  { %1996 = vmatpush3.bf16.msra.mxu1 %v2113_v25  ;;  %p2416_p4 = pnand %p2415_p3, %p2409_p0 }
  0x94   :  { %367 = vmatpush1.bf16.msra.mxu0 %v2112_v24  ;;  %1997 = vmatprep.subr.bf16.mxu1 %v2455_v4 }
  0x95   :  { %368 = vmatprep.subr.bf16.mxu0 %v2114_v26 }
  0x97   :  { %1998 = vmatpush3.bf16.msra.mxu1 %v2117_v28 }
  0x98   :  { %369 = vmatpush1.bf16.msra.mxu0 %v2116_v27  ;;  %1999 = vmatprep.subr.bf16.mxu1 %v2455_v4 }
  0x99   :  { %370 = vmatprep.subr.bf16.mxu0 %v2118_v29 }
  0x9b   :  { %2000 = vmatpush3.bf16.msra.mxu1 %v2121_v32 }
  0x9c   :  { %371 = vmatpush1.bf16.msra.mxu0 %v2120_v31  ;;  %2001 = vmatprep.subr.bf16.mxu1 %v2455_v4 }
  0x9d   :  { %372 = vmatprep.subr.bf16.mxu0 %v2122_v33 }
  0x9f   :  { %2002 = vmatpush3.bf16.msra.mxu1 %v2125_v35 }
  0xa0   :  { %373 = vmatpush1.bf16.msra.mxu0 %v2124_v34  ;;  %2007 = vmatprep.subr.bf16.mxu1 %v2455_v4 }
  0xa1   :  { %2031 = vmatprep.subr.bf16.mxu0 %v2455_v4 }
 0x10f   :  { %v142_v7 = vpop.xlane.xlu0 %141 }
 0x110   :  { %v146_v8 = vmul.f32 0.0078125, %v142_v7 }
 0x112   :  { %v2643_v9 = vsub.f32 %v2634_v0, %v146_v8 }
 0x113   :  { %v144_v10 = vpop.xlane.xlu0 %143 }
 0x114   :  { %v147_v11 = vmul.f32 0.0078125, %v144_v10  ;;  %v150_v12 = vmul.f32 %v2643_v9, %v2643_v9  ;;  %v218_v10 = vrot.slane %v213_v56, %v217_v59 }
 0x116   :  { %v2648_v13 = vsub.f32 %v2636_v1, %v147_v11  ;;  %152 = vadd.xlane.f32.xlu1 %v150_v12 }
 0x118   :  { %v151_v14 = vmul.f32 %v2648_v13, %v2648_v13 }
 0x11a   :  { %154 = vadd.xlane.f32.xlu1 %v151_v14 }
 0x1a3   :  { %v153_v36 = vpop.xlane.xlu1 %152 }
 0x1a4   :  { %v156_v37 = vmul.f32 0.0078125, %v153_v36 }
 0x1a6   :  { %v158_v38 = vadd.f32 1e-05, %v156_v37 }
 0x1a7   :  { %v155_v39 = vpop.xlane.xlu1 %154 }
 0x1a8   :  { %2214 = vrsqrt.f32 %v158_v38  ;;  %v157_v40 = vmul.f32 0.0078125, %v155_v39 }
 0x1aa   :  { %v159_v41 = vadd.f32 1e-05, %v157_v40 }
 0x1ac   :  { %2216 = vrsqrt.f32 %v159_v41 }
 0x1b2   :  { %v2215_v42 = vpop.eup %2214 }
 0x1b3   :  { %v162_v43 = vmul.f32 %v2215_v42, %v2643_v9 }
 0x1b5   :  { %v170_v47 = vmul.f32 %v1783_v44, %v162_v43 }
 0x1b6   :  { %v2217_v45 = vpop.eup %2216 }
 0x1b7   :  { %v163_v46 = vmul.f32 %v2217_v45, %v2648_v13  ;;  %v178_v50 = vadd.f32 %v1784_v48, %v170_v47 }
 0x1b9   :  { %v171_v49 = vmul.f32 %v1783_v44, %v163_v46 }
 0x1bb   :  { %v179_v51 = vadd.f32 %v1784_v48, %v171_v49 }
 0x1bd   :  { %v180_v52 = vpack.c.bf16 %v179_v51, %v178_v50 }
 0x1bf   :  { %391 = vmatmul.mubr.bf16.vlgmr.msra.gmra.mrb[0].mxu0 %v180_v52  ;;  %2004 = vmatmul.mubr.bf16.vlgmr.msra.gmra.mrb[0].mxu1 %v180_v52 }
 0x1c0   :  { %2009 = vmatprep.mubr.msk.bf16.mxu1 %vm2457_vm0, %v2455_v4  ;;  %2033 = vmatprep.mubr.msk.bf16.mxu0 %vm2457_vm0, %v2455_v4 }
 0x292   :  { %v392_v60 = vpop.f32.mrb[0].mxu0  ;;  %v435_v61 = vpop.f32.mrb[0].mxu1 }
 0x293   :  { %v394_v63 = vpop.f32.mrb[1].mxu0  ;;  %v2005_v2 = vpop.f32.mrb[1].mxu1  ;;  %v393_v14 = vadd.f32 %v392_v60, %v218_v10  ;;  %v436_v17 = vadd.f32 %v435_v61, %v226_v62 }
 0x294   :  { %v395_v3 = vadd.f32 %v394_v63, %v222_v58  ;;  %v396_v5 = vpop.f32.mrb[2].mxu0  ;;  %v438_v6 = vpop.f32.mrb[2].mxu1 }
 0x295   :  { %v2681_v7 = vadd.f32 %v438_v6, %v226_v62  ;;  %v398_v8 = vpop.f32.mrb[3].mxu0  ;;  %v2006_v9 = vpop.f32.mrb[3].mxu1  ;;  %v1901_v16 = vpack.c.bf16 %v393_v14, %v393_v14  ;;  %v397_v19 = vadd.f32 %v396_v5, %v218_v10  ;;  %v2692_v20 = vpack.c.bf16 %v436_v17, %v436_v17 }
 0x296   :  { %v1903_v11 = vpack.c.bf16 %v395_v3, %v395_v3  ;;  %v399_v13 = vadd.f32 %v398_v8, %v222_v58 }
 0x297   :  { %v1902_v21 = vpack.c.bf16 %v397_v19, %v397_v19  ;;  %v583_v22 = vsel %vm581_vm2, %v2692_v20, 0  ;;  %v1906_v50 = vpack.c.bf16 %v2681_v7, %v2681_v7 }
 0x298   :  { %v465_v12 = vsel %vm460_vm1, %v1903_v11, 0  ;;  %v1904_v15 = vpack.c.bf16 %v399_v13, %v399_v13 }
 0x299   :  { %2008 = vmatpush3.bf16.xpose.msra.mxu1 %v465_v12  ;;  %v629_v56 = vsel %vm581_vm2, %v1906_v50, 0 }
 0x29a   :  { %2013 = vmatprep.subr.bf16.mxu1 %v2455_v4  ;;  %v511_v18 = vsel %vm460_vm1, %v1904_v15, 0 }
 0x2a0   :  { %2010 = vmatmul.mubr.msk.bf16.vlgmr.msra.gmra.mrb[4].mxu1 %vm460_vm1, %v1901_v16 }
 0x2a1   :  { %2014 = vmatpush3.bf16.xpose.msra.mxu1 %v511_v18  ;;  %2015 = vmatprep.mubr.msk.bf16.mxu1 %vm2457_vm0, %v2455_v4 }
 0x2a2   :  { %2019 = vmatprep.subr.bf16.mxu1 %v2455_v4 }
 0x2a8   :  { %2016 = vmatmul.mubr.msk.bf16.vlgmr.msra.gmra.mrb[8].mxu1 %vm460_vm1, %v1902_v21 }
 0x2a9   :  { %2020 = vmatpush3.bf16.msra.mxu1 %v583_v22  ;;  %2021 = vmatprep.mubr.msk.bf16.mxu1 %vm2457_vm0, %v2455_v4 }
 0x2aa   :  { %2025 = vmatprep.subr.bf16.mxu1 %v2455_v4 }
 0x373   :  { %v501_v23 = vpop.f32.mrb[4].mxu1 }
 0x374   :  { %v2011_v24 = vpop.f32.mrb[5].mxu1  ;;  %v554_v25 = vsel %vm553_vm3, %v501_v23, -inf }
 0x375   :  { %555 = vmax.xlane.f32.xlu0 %v554_v25  ;;  %v504_v26 = vpop.f32.mrb[6].mxu1 }
 0x376   :  { %v2012_v27 = vpop.f32.mrb[7].mxu1 }
 0x37b   :  { %v547_v28 = vpop.f32.mrb[8].mxu1 }
 0x37c   :  { %v2017_v29 = vpop.f32.mrb[9].mxu1  ;;  %v557_v31 = vsel %vm553_vm3, %v547_v28, -inf }
 0x37d   :  { %558 = vmax.xlane.f32.xlu1 %v557_v31  ;;  %v550_v32 = vpop.f32.mrb[10].mxu1 }
 0x37e   :  { %v2018_v33 = vpop.f32.mrb[11].mxu1 }
 0x38e   :  { %725 = vrot.lane.b32.xlu1 %v1904_v15, %s2452_s2 }
 0x402   :  { %v556_v34 = vpop.xlane.xlu0 %555 }
 0x403   :  { %v560_v35 = vsub.f32 %v501_v23, %v556_v34 }
 0x405   :  { %v562_v36 = vmul.f32 1.442695, %v560_v35 }
 0x407   :  { %2218 = vpow2.f32 %v562_v36 }
 0x40a   :  { %v559_v37 = vpop.xlane.xlu1 %558 }
 0x40b   :  { %v561_v38 = vsub.f32 %v547_v28, %v559_v37 }
 0x40d   :  { %v564_v39 = vmul.f32 1.442695, %v561_v38 }
 0x40e   :  { %v726_v45 = vpop.permute.xlu1 %725 }
 0x40f   :  { %2220 = vpow2.f32 %v564_v39  ;;  %v731_v62 = vsel %vm460_vm1, %v726_v45, 0  ;;  %v2126_v45 = vld [vmem:[#allocation10] sm:$0xff]  }
 0x411   :  { %v2219_v40 = vpop.eup %2218 }
 0x412   :  { %v566_v41 = vsel %vm553_vm3, %v2219_v40, 0.0 }
 0x413   :  { %567 = vadd.xlane.f32.xlu0 %v566_v41 }
 0x419   :  { %v2221_v42 = vpop.eup %2220 }
 0x41a   :  { %v569_v43 = vsel %vm553_vm3, %v2221_v42, 0.0 }
 0x41b   :  { %570 = vadd.xlane.f32.xlu1 %v569_v43 }
 0x429   :  { %675 = vrot.lane.b32.xlu0 %v1903_v11, %s2452_s2 }
 0x42c   :  { %673 = vrot.lane.b32.xlu1 %v1901_v16, %s2452_s2 }
 0x430   :  { %723 = vrot.lane.b32.xlu1 %v1902_v21, %s2452_s2 }
 0x4a0   :  { %v568_v44 = vpop.xlane.xlu0 %567 }
 0x4a1   :  { %2222 = vrcp.f32 %v568_v44 }
 0x4a4   :  { %v676_v46 = vpop.permute.xlu0 %675 }
 0x4a5   :  { %v681_v47 = vsel %vm460_vm1, %v676_v46, 0  ;;  %v2127_v46 = vld [vmem:[#allocation10 + $0x8] sm:$0xff]  }
 0x4a6   :  { %2032 = vmatpush3.bf16.xpose.msra.mxu0 %v681_v47  ;;  %v2128_v47 = vld [vmem:[#allocation10 + $0x10] sm:$0xff]  }
 0x4a7   :  { %2043 = vmatprep.subr.bf16.mxu0 %v2455_v4 }
 0x4a8   :  { %v571_v48 = vpop.xlane.xlu1 %570 }
 0x4a9   :  { %2224 = vrcp.f32 %v571_v48  ;;  %v2129_v48 = vld [vmem:[#allocation10 + $0x18] sm:$0xff]  }
 0x4ab   :  { %v2223_v49 = vpop.eup %2222 }
 0x4ac   :  { %v574_v51 = vmul.f32 %v2223_v49, %v2219_v40  ;;  %v674_v52 = vpop.permute.xlu1 %673  ;;  %v2130_v49 = vld [vmem:[#allocation10 + $0x20] sm:$0xff]  }
 0x4ad   :  { %2034 = vmatmul.mubr.msk.bf16.vlgmr.msra.gmra.mrb[4].mxu0 %vm460_vm1, %v674_v52  ;;  %v2133_v52 = vld [vmem:[#allocation10 + $0x38] sm:$0xff]  }
 0x4ae   :  { %v576_v53 = vpack.c.bf16 %v574_v51, %v574_v51  ;;  %2045 = vmatprep.mubr.msk.bf16.mxu0 %vm2457_vm0, %v2455_v4  ;;  %v2132_v51 = vld [vmem:[#allocation10 + $0x30] sm:$0xff]  }
 0x4b0   :  { %2022 = vmatmul.mubr.msk.bf16.vlgmr.msra.gmra.mrb[12].mxu1 %vm553_vm3, %v576_v53  ;;  %v724_v63 = vpop.permute.xlu1 %723 }
 0x4b1   :  { %2026 = vmatpush3.bf16.msra.mxu1 %v629_v56  ;;  %2027 = vmatprep.mubr.msk.bf16.mxu1 %vm2457_vm0, %v2455_v4 }
 0x4b2   :  { %2037 = vmatprep.subr.bf16.mxu1 %v2455_v4 }
 0x4b3   :  { %v2225_v58 = vpop.eup %2224 }
 0x4b4   :  { %v575_v60 = vmul.f32 %v2225_v58, %v2221_v42 }
 0x4b6   :  { %v577_v61 = vpack.c.bf16 %v575_v60, %v575_v60 }
 0x4b8   :  { %2028 = vmatmul.mubr.msk.bf16.vlgmr.msra.gmra.mrb[16].mxu1 %vm553_vm3, %v577_v61 }
 0x4b9   :  { %2039 = vmatprep.mubr.msk.bf16.mxu1 %vm2457_vm0, %v2455_v4 }
 0x4ba   :  { %2038 = vmatpush3.bf16.xpose.msra.mxu1 %v731_v62 }
 0x4bb   :  { %2049 = vmatprep.subr.bf16.mxu1 %v2455_v4 }
 0x4c1   :  { %2040 = vmatmul.mubr.msk.bf16.vlgmr.msra.gmra.mrb[20].mxu1 %vm460_vm1, %v724_v63 }
 0x4c2   :  { %2051 = vmatprep.mubr.msk.bf16.mxu1 %vm2457_vm0, %v2455_v4 }
 0x580   :  { %v717_v2 = vpop.f32.mrb[4].mxu0 }
 0x581   :  { %v2035_v3 = vpop.f32.mrb[5].mxu0  ;;  %v773_v5 = vsel %vm553_vm3, %v717_v2, -inf }
 0x582   :  { %774 = vmax.xlane.f32.xlu0 %v773_v5  ;;  %v720_v6 = vpop.f32.mrb[6].mxu0 }
 0x583   :  { %v2729_v7 = vpop.f32.mrb[12].mxu1  ;;  %v2036_v8 = vpop.f32.mrb[7].mxu0 }
 0x584   :  { %v2023_v9 = vpop.f32.mrb[13].mxu1  ;;  %v1833_v8 = vld [vmem:[%s2827_s6] ss:$0 sm:$0xff] }
 0x585   :  { %v622_v10 = vpop.f32.mrb[14].mxu1 }
 0x586   :  { %v2024_v11 = vpop.f32.mrb[15].mxu1 }
 0x58b   :  { %v2731_v12 = vpop.f32.mrb[16].mxu1 }
 0x58c   :  { %v1907_v13 = vpack.c.bf16 %v2731_v12, %v2729_v7  ;;  %v2029_v14 = vpop.f32.mrb[17].mxu1  ;;  %v2136_v12 = vld [vmem:[#allocation11 + $0x4] ss:$16 sps:$4 sm:$0xff]  }
 0x58d   :  { %v668_v15 = vpop.f32.mrb[18].mxu1 }
 0x58e   :  { %v2030_v16 = vpop.f32.mrb[19].mxu1 }
 0x594   :  { %v767_v17 = vpop.f32.mrb[20].mxu1 }
 0x595   :  { %v2041_v18 = vpop.f32.mrb[21].mxu1  ;;  %v776_v19 = vsel %vm553_vm3, %v767_v17, -inf }
 0x596   :  { %777 = vmax.xlane.f32.xlu1 %v776_v19  ;;  %v770_v21 = vpop.f32.mrb[22].mxu1  ;;  %v2142_v18 = vld [vmem:[#allocation11 + $0x24] ss:$16 sps:$4 sm:$0xff]   ;;  %v2140_v19 = vld [vmem:[#allocation11 + $0x20] ss:$16 sps:$4 sm:$0xff]  }
 0x597   :  { %v2042_v22 = vpop.f32.mrb[23].mxu1 }
 0x5a7   :  { %845 = vrot.lane.b32.xlu1 %v1906_v50, %s2452_s2  ;;  %v2131_v50 = vld [vmem:[#allocation10 + $0x28] sm:$0xff]  }
 0x60f   :  { %v775_v23 = vpop.xlane.xlu0 %774 }
 0x610   :  { %v779_v24 = vsub.f32 %v717_v2, %v775_v23 }
 0x612   :  { %v781_v25 = vmul.f32 1.442695, %v779_v24 }
 0x614   :  { %2226 = vpow2.f32 %v781_v25 }
 0x61e   :  { %v2227_v26 = vpop.eup %2226 }
 0x61f   :  { %v785_v27 = vsel %vm553_vm3, %v2227_v26, 0.0 }
 0x620   :  { %786 = vadd.xlane.f32.xlu0 %v785_v27 }
 0x623   :  { %v778_v28 = vpop.xlane.xlu1 %777 }
 0x624   :  { %v780_v29 = vsub.f32 %v767_v17, %v778_v28  ;;  %v2139_v17 = vld [vmem:[#allocation11 + $0xc] ss:$16 sps:$4 sm:$0xff]  }
 0x626   :  { %v783_v31 = vmul.f32 1.442695, %v780_v29  ;;  %v2148_v29 = vld [vmem:[#allocation11 + $0x44] ss:$16 sps:$4 sm:$0xff]  }
 0x627   :  { %v846_v32 = vpop.permute.xlu1 %845 }
 0x628   :  { %2228 = vpow2.f32 %v783_v31  ;;  %v851_v33 = vsel %vm581_vm2, %v846_v32, 0  ;;  %v2151_v31 = vld [vmem:[#allocation11 + $0x4c] ss:$16 sps:$4 sm:$0xff]   ;;  %v2146_v32 = vld [vmem:[#allocation11 + $0x40] ss:$16 sps:$4 sm:$0xff]  }
 0x629   :  { %2050 = vmatpush3.bf16.msra.mxu1 %v851_v33  ;;  %v2149_v33 = vld [vmem:[#allocation11 + $0x48] ss:$16 sps:$4 sm:$0xff]  }
 0x62a   :  { %1282 = vmatprep.subr.bf16.mxu1 %v2136_v12  ;;  %v2185_v12 = vld [vmem:[#allocation13 + $0x80] sm:$0xff]  }
 0x632   :  { %v2229_v34 = vpop.eup %2228 }
 0x633   :  { %v788_v35 = vsel %vm553_vm3, %v2229_v34, 0.0 }
 0x634   :  { %789 = vadd.xlane.f32.xlu0 %v788_v35  ;;  %v2157_v35 = vld [vmem:[#allocation11 + $0x6c] ss:$16 sps:$4 sm:$0xff]  }
 0x64a   :  { %797 = vrot.lane.b32.xlu0 %v2692_v20, %s2452_s2 }
 0x6ad   :  { %v787_v36 = vpop.xlane.xlu0 %786 }
 0x6ae   :  { %2230 = vrcp.f32 %v787_v36  ;;  %v2152_v36 = vld [vmem:[#allocation11 + $0x60] ss:$16 sps:$4 sm:$0xff]  }
 0x6b8   :  { %v2231_v37 = vpop.eup %2230 }
 0x6b9   :  { %v793_v39 = vmul.f32 %v2231_v37, %v2227_v26  ;;  %v2155_v37 = vld [vmem:[#allocation11 + $0x68] ss:$16 sps:$4 sm:$0xff]  }
 0x6bb   :  { %v795_v42 = vpack.c.bf16 %v793_v39, %v793_v39  ;;  %v2163_v39 = vld [vmem:[#allocation11 + $0x8c] ss:$16 sps:$4 sm:$0xff]  }
 0x6c1   :  { %v790_v38 = vpop.xlane.xlu0 %789 }
 0x6c2   :  { %2232 = vrcp.f32 %v790_v38  ;;  %v2160_v38 = vld [vmem:[#allocation11 + $0x84] ss:$16 sps:$4 sm:$0xff]  }
 0x6c5   :  { %v798_v40 = vpop.permute.xlu0 %797 }
 0x6c6   :  { %v803_v41 = vsel %vm581_vm2, %v798_v40, 0  ;;  %v2158_v40 = vld [vmem:[#allocation11 + $0x80] ss:$16 sps:$4 sm:$0xff]  }
 0x6c7   :  { %2044 = vmatpush3.bf16.msra.mxu0 %v803_v41  ;;  %v2161_v41 = vld [vmem:[#allocation11 + $0x88] ss:$16 sps:$4 sm:$0xff]  }
 0x6c8   :  { %2055 = vmatprep.subr.bf16.mxu0 %v2455_v4 }
 0x6ca   :  { %2046 = vmatmul.mubr.msk.bf16.vlgmr.msra.gmra.mrb[8].mxu0 %vm553_vm3, %v795_v42  ;;  %v2166_v42 = vld [vmem:[#allocation11 + $0xa4] ss:$16 sps:$4 sm:$0xff]  }
 0x6cb   :  { %2071 = vmatprep.mubr.msk.bf16.mxu0 %vm2457_vm0, %v2455_v4  ;;  %2056 = vmatpush3.bf16.msra.mxu0 %v2126_v45  ;;  %v2172_v45 = vld [vmem:[#allocation11 + $0xc4] ss:$16 sps:$4 sm:$0xff]  }
 0x6cc   :  { %v2233_v43 = vpop.eup %2232  ;;  %2057 = vmatprep.subr.bf16.mxu0 %v2455_v4 }
 0x6cd   :  { %v794_v20 = vmul.f32 %v2233_v43, %v2229_v34  ;;  %v2154_v34 = vld [vmem:[#allocation11 + $0x64] ss:$16 sps:$4 sm:$0xff]   ;;  %v2169_v43 = vld [vmem:[#allocation11 + $0xac] ss:$16 sps:$4 sm:$0xff]  }
 0x6cf   :  { %v796_v44 = vpack.c.bf16 %v794_v20, %v794_v20  ;;  %2058 = vmatpush3.bf16.msra.mxu0 %v2127_v46  ;;  %v2164_v20 = vld [vmem:[#allocation11 + $0xa0] ss:$16 sps:$4 sm:$0xff]   ;;  %v2175_v46 = vld [vmem:[#allocation11 + $0xcc] ss:$16 sps:$4 sm:$0xff]  }
 0x6d0   :  { %2059 = vmatprep.subr.bf16.mxu0 %v2455_v4 }
 0x6d1   :  { %2052 = vmatmul.mubr.msk.bf16.vlgmr.msra.gmra.mrb[24].mxu1 %vm553_vm3, %v796_v44  ;;  %v2167_v44 = vld [vmem:[#allocation11 + $0xa8] ss:$16 sps:$4 sm:$0xff]  }
 0x6d2   :  { %1314 = vmatprep.mubr.bf16.mxu1 %v2456_v30 }
 0x6d3   :  { %2060 = vmatpush3.bf16.msra.mxu0 %v2128_v47  ;;  %v2170_v47 = vld [vmem:[#allocation11 + $0xc0] ss:$16 sps:$4 sm:$0xff]  }
 0x6d4   :  { %2061 = vmatprep.subr.bf16.mxu0 %v2455_v4 }
 0x6d7   :  { %2062 = vmatpush3.bf16.msra.mxu0 %v2129_v48  ;;  %v2173_v48 = vld [vmem:[#allocation11 + $0xc8] ss:$16 sps:$4 sm:$0xff]  }
 0x6d8   :  { %2063 = vmatprep.subr.bf16.mxu0 %v2455_v4 }
 0x6db   :  { %2064 = vmatpush3.bf16.msra.mxu0 %v2130_v49  ;;  %v2178_v49 = vld [vmem:[#allocation11 + $0xe4] ss:$16 sps:$4 sm:$0xff]  }
 0x6dc   :  { %2065 = vmatprep.subr.bf16.mxu0 %v2455_v4 }
 0x6df   :  { %2066 = vmatpush3.bf16.msra.mxu0 %v2131_v50  ;;  %v2176_v50 = vld [vmem:[#allocation11 + $0xe0] ss:$16 sps:$4 sm:$0xff]  }
 0x6e0   :  { %2067 = vmatprep.subr.bf16.mxu0 %v2455_v4 }
 0x6e3   :  { %2068 = vmatpush3.bf16.msra.mxu0 %v2132_v51  ;;  %v2179_v51 = vld [vmem:[#allocation11 + $0xe8] ss:$16 sps:$4 sm:$0xff]  }
 0x6e4   :  { %2069 = vmatprep.subr.bf16.mxu0 %v2455_v4 }
 0x6e7   :  { %2070 = vmatpush3.bf16.msra.mxu0 %v2133_v52  ;;  %v2181_v52 = vld [vmem:[#allocation11 + $0xec] ss:$16 sps:$4 sm:$0xff]  }
 0x6e8   :  { %1325 = vmatprep.subr.bf16.mxu0 %v2139_v17  ;;  %v2186_v17 = vld [vmem:[#allocation13 + $0x48] sm:$0xff]  }
 0x79d   :  { %v839_v53 = vpop.f32.mrb[8].mxu0 }
 0x79e   :  { %v2047_v56 = vpop.f32.mrb[9].mxu0 }
 0x79f   :  { %v842_v58 = vpop.f32.mrb[10].mxu0  ;;  %v2183_v56 = vld [vmem:[#allocation13 + $0xc0] sm:$0xff]  }
 0x7a0   :  { %v2048_v60 = vpop.f32.mrb[11].mxu0 }
 0x7a4   :  { %v887_v61 = vpop.f32.mrb[24].mxu1 }
 0x7a5   :  { %v1908_v62 = vpack.c.bf16 %v887_v61, %v839_v53  ;;  %v2053_v63 = vpop.f32.mrb[25].mxu1  ;;  %v2182_v53 = vld [vmem:[#allocation13 + $0x40] sm:$0xff]  }
 0x7a6   :  { %v890_v2 = vpop.f32.mrb[26].mxu1 }
 0x7a7   :  { %905 = vrot.lane.b32.xlu1 %v1908_v62, %s2452_s2  ;;  %v2054_v3 = vpop.f32.mrb[27].mxu1 }
 0x819   :  { %v906_v5 = vpop.permute.xlu1 %905 }
 0x81a   :  { %v909_v6 = vsel %vm460_vm1, %v1907_v13, %v906_v5  ;;  %v2137_v13 = vld [vmem:[#allocation11 + $0x8] ss:$16 sps:$4 sm:$0xff]  }
 0x81b   :  { %2072 = vmatmul.mubr.bf16.vlgmr.msra.gmra.mrb[12].mxu0 %v909_v6  ;;  %v1834_v6 = vld [vmem:[%s2828_s7] ss:$0 sm:$0xff] }
 0x81c   :  { %1357 = vmatprep.mubr.bf16.mxu0 %v2456_v30  ;;  %v2134_v30 = vld [vmem:[#allocation11] ss:$16 sps:$4 sm:$0xff]   ;;  %1326 = vmatpush1.bf16.msra.mxu0 %v2137_v13 }
 0x81d   :  { %1283 = vmatpush1.bf16.msra.mxu1 %v2134_v30  ;;  %v2184_v30 = vld [vmem:[#allocation13] sm:$0xff]  }
 0x81e   :  { %1284 = vmatprep.subr.bf16.mxu1 %v2142_v18  ;;  %v2187_v18 = vld [vmem:[#allocation13 + $0xc8] sm:$0xff]  }
 0x821   :  { %1285 = vmatpush1.bf16.msra.mxu1 %v2140_v19  ;;  %v2189_v19 = vld [vmem:[#allocation13 + $0x88] sm:$0xff]  }
 0x822   :  { %1286 = vmatprep.subr.bf16.mxu1 %v2148_v29  ;;  %v2199_v29 = vld [vmem:[#allocation13 + $0xe0] sm:$0xff]  }
 0x825   :  { %1287 = vmatpush1.bf16.msra.mxu1 %v2146_v32  ;;  %v2201_v32 = vld [vmem:[#allocation13 + $0xa0] sm:$0xff]  }
 0x826   :  { %1288 = vmatprep.subr.bf16.mxu1 %v2154_v34  ;;  %v2203_v34 = vld [vmem:[#allocation13 + $0xe8] sm:$0xff]  }
 0x829   :  { %1289 = vmatpush1.bf16.msra.mxu1 %v2152_v36  ;;  %v2205_v36 = vld [vmem:[#allocation13 + $0xa8] sm:$0xff]  }
 0x82a   :  { %1290 = vmatprep.subr.bf16.mxu1 %v2160_v38  ;;  %v2207_v38 = vld [vmem:[#allocation13 + $0xf0] sm:$0xff]  }
 0x82d   :  { %1291 = vmatpush1.bf16.msra.mxu1 %v2158_v40  ;;  %v2209_v40 = vld [vmem:[#allocation13 + $0xb0] sm:$0xff]  }
 0x82e   :  { %1292 = vmatprep.subr.bf16.mxu1 %v2166_v42  ;;  %v2211_v42 = vld [vmem:[#allocation13 + $0xf8] sm:$0xff]  }
 0x831   :  { %1293 = vmatpush1.bf16.msra.mxu1 %v2164_v20  ;;  %v2213_v20 = vld [vmem:[#allocation13 + $0xb8] sm:$0xff]  }
 0x832   :  { %1294 = vmatprep.subr.bf16.mxu1 %v2172_v45  ;;  %v1116_v45 = vsub.s32 3, %v2669_v54 }
 0x835   :  { %1295 = vmatpush1.bf16.msra.mxu1 %v2170_v47 }
 0x836   :  { %1296 = vmatprep.subr.bf16.mxu1 %v2178_v49 }
 0x839   :  { %1297 = vmatpush1.bf16.msra.mxu1 %v2176_v50 }
 0x83a   :  { %1943 = vmatprep.subr.bf16.mxu1 %v2182_v53 }
 0x8ee   :  { %v1009_v4 = vpop.f32.mrb[12].mxu0 }
 0x8ef   :  { %v1016_v9 = vadd.f32 %v1009_v4, %v2634_v0  ;;  %v2073_v10 = vpop.f32.mrb[13].mxu0  ;;  %v2145_v0 = vld [vmem:[#allocation11 + $0x2c] ss:$16 sps:$4 sm:$0xff]  }
 0x8f0   :  { %v1012_v11 = vpop.f32.mrb[14].mxu0  ;;  %1327 = vmatprep.subr.bf16.mxu0 %v2145_v0  ;;  %v1835_v10 = vld [vmem:[%s2829_s8] ss:$0 sm:$0xff] }
 0x8f1   :  { %v2766_v14 = vadd.f32 %v1833_v8, %v1016_v9  ;;  %v1017_v15 = vadd.f32 %v1012_v11, %v2636_v1  ;;  %v2074_v16 = vpop.f32.mrb[15].mxu0  ;;  %v2143_v1 = vld [vmem:[#allocation11 + $0x28] ss:$16 sps:$4 sm:$0xff]  }
 0x8f2   :  { %1328 = vmatpush1.bf16.msra.mxu0 %v2143_v1  ;;  %v2188_v0 = vld [vmem:[#allocation13 + $0x8] sm:$0xff]   ;;  %v2190_v1 = vld [vmem:[#allocation13 + $0x50] sm:$0xff]  }
 0x8f3   :  { %v2769_v7 = vadd.f32 %v1833_v8, %v1017_v15  ;;  %1029 = vadd.xlane.f32.xlu1 %v2766_v14  ;;  %1329 = vmatprep.subr.bf16.mxu0 %v2151_v31  ;;  %v2200_v31 = vld [vmem:[#allocation13 + $0x20] sm:$0xff]  }
 0x8f5   :  { %1031 = vadd.xlane.f32.xlu0 %v2769_v7 }
 0x8f6   :  { %1330 = vmatpush1.bf16.msra.mxu0 %v2149_v33  ;;  %v2202_v33 = vld [vmem:[#allocation13 + $0x68] sm:$0xff]  }
 0x8f7   :  { %1331 = vmatprep.subr.bf16.mxu0 %v2157_v35  ;;  %v2204_v35 = vld [vmem:[#allocation13 + $0x28] sm:$0xff]  }
 0x8fa   :  { %1332 = vmatpush1.bf16.msra.mxu0 %v2155_v37  ;;  %v2206_v37 = vld [vmem:[#allocation13 + $0x70] sm:$0xff]  }
 0x8fb   :  { %1333 = vmatprep.subr.bf16.mxu0 %v2163_v39  ;;  %v2208_v39 = vld [vmem:[#allocation13 + $0x30] sm:$0xff]  }
 0x8fe   :  { %1334 = vmatpush1.bf16.msra.mxu0 %v2161_v41  ;;  %v2210_v41 = vld [vmem:[#allocation13 + $0x78] sm:$0xff]  }
 0x8ff   :  { %1335 = vmatprep.subr.bf16.mxu0 %v2169_v43  ;;  %v2212_v43 = vld [vmem:[#allocation13 + $0x38] sm:$0xff]  }
 0x902   :  { %1336 = vmatpush1.bf16.msra.mxu0 %v2167_v44  ;;  %v1100_v44 = vld [vmem:[%s2831_s10] sm:$0xf] }
 0x903   :  { %1337 = vmatprep.subr.bf16.mxu0 %v2175_v46  ;;  %v1105_v46 = vrot.slane %v1100_v44, %v217_v59  ;;  %v1113_v47 = vrot.slane %v1100_v44, %v225_v57  ;;  %v1117_v49 = vrot.slane %v1100_v44, %v1116_v45 }
 0x906   :  { %1338 = vmatpush1.bf16.msra.mxu0 %v2173_v48  ;;  %v1109_v48 = vrot.slane %v1100_v44, %v221_v55 }
 0x907   :  { %1339 = vmatprep.subr.bf16.mxu0 %v2181_v52 }
 0x90a   :  { %1340 = vmatpush1.bf16.msra.mxu0 %v2179_v51 }
 0x90b   :  { %1965 = vmatprep.subr.bf16.mxu0 %v2183_v56 }
 0x980   :  { %v1030_v21 = vpop.xlane.xlu1 %1029 }
 0x981   :  { %v1033_v22 = vmul.f32 0.0078125, %v1030_v21  ;;  %v2191_v21 = vld [vmem:[#allocation13 + $0xd0] sm:$0xff]  }
 0x982   :  { %v1032_v23 = vpop.xlane.xlu0 %1031 }
 0x983   :  { %v2774_v24 = vsub.f32 %v2766_v14, %v1033_v22  ;;  %v1034_v25 = vmul.f32 0.0078125, %v1032_v23  ;;  %v2192_v22 = vld [vmem:[#allocation13 + $0x10] sm:$0xff]  }
 0x984   :  { %v2193_v23 = vld [vmem:[#allocation13 + $0x90] sm:$0xff]  }
 0x985   :  { %v2777_v26 = vsub.f32 %v2769_v7, %v1034_v25  ;;  %v1037_v27 = vmul.f32 %v2774_v24, %v2774_v24  ;;  %v2195_v25 = vld [vmem:[#allocation13 + $0xd8] sm:$0xff]  }
 0x987   :  { %1039 = vadd.xlane.f32.xlu0 %v1037_v27  ;;  %v1038_v28 = vmul.f32 %v2777_v26, %v2777_v26  ;;  %v2197_v27 = vld [vmem:[#allocation13 + $0x98] sm:$0xff]  }
 0x98b   :  { %1041 = vadd.xlane.f32.xlu0 %v1038_v28  ;;  %v2198_v28 = vld [vmem:[#allocation13 + $0x60] sm:$0xff]  }
 0xa14   :  { %v1040_v58 = vpop.xlane.xlu0 %1039 }
 0xa15   :  { %v1043_v60 = vmul.f32 0.0078125, %v1040_v58 }
 0xa17   :  { %v1045_v61 = vadd.f32 1e-05, %v1043_v60 }
 0xa18   :  { %v1042_v62 = vpop.xlane.xlu0 %1041 }
 0xa19   :  { %2234 = vrsqrt.f32 %v1045_v61  ;;  %v1044_v63 = vmul.f32 0.0078125, %v1042_v62 }
 0xa1b   :  { %v1046_v2 = vadd.f32 1e-05, %v1044_v63 }
 0xa1d   :  { %2236 = vrsqrt.f32 %v1046_v2 }
 0xa23   :  { %v2235_v3 = vpop.eup %2234 }
 0xa24   :  { %v1049_v5 = vmul.f32 %v2235_v3, %v2774_v24  ;;  %v2194_v24 = vld [vmem:[#allocation13 + $0x58] sm:$0xff]  }
 0xa26   :  { %v1057_v9 = vmul.f32 %v1834_v6, %v1049_v5 }
 0xa27   :  { %v2237_v4 = vpop.eup %2236 }
 0xa28   :  { %v1050_v8 = vmul.f32 %v2237_v4, %v2777_v26  ;;  %v1065_v15 = vadd.f32 %v1835_v10, %v1057_v9  ;;  %v2196_v26 = vld [vmem:[#allocation13 + $0x18] sm:$0xff]  }
 0xa2a   :  { %v1058_v11 = vmul.f32 %v1834_v6, %v1050_v8 }
 0xa2c   :  { %v1066_v16 = vadd.f32 %v1835_v10, %v1058_v11 }
 0xa2e   :  { %v1067_v13 = vpack.c.bf16 %v1066_v16, %v1065_v15 }
 0xa30   :  { %1315 = vmatmul.mubr.bf16.vlgmr.msra.gmra.mrb[28].mxu1 %v1067_v13  ;;  %1358 = vmatmul.mubr.bf16.vlgmr.msra.gmra.mrb[16].mxu0 %v1067_v13 }
 0xa31   :  { %1944 = vmatpush3.bf16.msra.mxu1 %v2184_v30  ;;  %1966 = vmatpush3.bf16.msra.mxu0 %v2185_v12 }
 0xa32   :  { %1945 = vmatprep.subr.bf16.mxu1 %v2186_v17  ;;  %1967 = vmatprep.subr.bf16.mxu0 %v2187_v18 }
 0xa35   :  { %1946 = vmatpush3.bf16.msra.mxu1 %v2188_v0  ;;  %1968 = vmatpush3.bf16.msra.mxu0 %v2189_v19 }
 0xa36   :  { %1947 = vmatprep.subr.bf16.mxu1 %v2190_v1  ;;  %1969 = vmatprep.subr.bf16.mxu0 %v2191_v21 }
 0xa39   :  { %1948 = vmatpush3.bf16.msra.mxu1 %v2192_v22  ;;  %1970 = vmatpush3.bf16.msra.mxu0 %v2193_v23 }
 0xa3a   :  { %1949 = vmatprep.subr.bf16.mxu1 %v2194_v24  ;;  %1971 = vmatprep.subr.bf16.mxu0 %v2195_v25 }
 0xa3d   :  { %1950 = vmatpush3.bf16.msra.mxu1 %v2196_v26  ;;  %1972 = vmatpush3.bf16.msra.mxu0 %v2197_v27 }
 0xa3e   :  { %1951 = vmatprep.subr.bf16.mxu1 %v2198_v28  ;;  %1973 = vmatprep.subr.bf16.mxu0 %v2199_v29 }
 0xa41   :  { %1952 = vmatpush3.bf16.msra.mxu1 %v2200_v31  ;;  %1974 = vmatpush3.bf16.msra.mxu0 %v2201_v32 }
 0xa42   :  { %1953 = vmatprep.subr.bf16.mxu1 %v2202_v33  ;;  %1975 = vmatprep.subr.bf16.mxu0 %v2203_v34 }
 0xa45   :  { %1954 = vmatpush3.bf16.msra.mxu1 %v2204_v35  ;;  %1976 = vmatpush3.bf16.msra.mxu0 %v2205_v36 }
 0xa46   :  { %1955 = vmatprep.subr.bf16.mxu1 %v2206_v37  ;;  %1977 = vmatprep.subr.bf16.mxu0 %v2207_v38 }
 0xa49   :  { %1956 = vmatpush3.bf16.msra.mxu1 %v2208_v39  ;;  %1978 = vmatpush3.bf16.msra.mxu0 %v2209_v40 }
 0xa4a   :  { %1957 = vmatprep.subr.bf16.mxu1 %v2210_v41  ;;  %1979 = vmatprep.subr.bf16.mxu0 %v2211_v42 }
 0xa4d   :  { %1958 = vmatpush3.bf16.msra.mxu1 %v2212_v43  ;;  %1980 = vmatpush3.bf16.msra.mxu0 %v2213_v20 }
 0xb03   :  { %v1316_v50 = vpop.f32.mrb[28].mxu1  ;;  %v1359_v51 = vpop.f32.mrb[16].mxu0 }
 0xb04   :  { %v1317_v52 = vadd.f32 %v1316_v50, %v1105_v46  ;;  %v1360_v53 = vadd.f32 %v1359_v51, %v1113_v47  ;;  %v1318_v56 = vpop.f32.mrb[29].mxu1  ;;  %v1361_v58 = vpop.f32.mrb[17].mxu0 }
 0xb05   :  { %v1319_v60 = vadd.f32 %v1318_v56, %v1109_v48  ;;  %v1362_v61 = vadd.f32 %v1361_v58, %v1117_v49  ;;  %v1320_v62 = vpop.f32.mrb[30].mxu1  ;;  %v1363_v63 = vpop.f32.mrb[18].mxu0 }
 0xb06   :  { %v1376_v2 = vmul.f32 0.70710677, %v1317_v52  ;;  %v1378_v3 = vmul.f32 0.70710677, %v1360_v53  ;;  %v1321_v57 = vadd.f32 %v1320_v62, %v1105_v46  ;;  %v1364_v6 = vadd.f32 %v1363_v63, %v1113_v47  ;;  %v1322_v54 = vpop.f32.mrb[31].mxu1  ;;  %v1365_v55 = vpop.f32.mrb[19].mxu0 }
 0xb07   :  { %v1377_v59 = vmul.f32 0.70710677, %v1319_v60  ;;  %v1379_v5 = vmul.f32 0.70710677, %v1362_v61  ;;  %v1323_v4 = vadd.f32 %v1322_v54, %v1109_v48  ;;  %v1366_v8 = vadd.f32 %v1365_v55, %v1117_v49 }
 0xb08   :  { %2238 = verf.f32 %v1376_v2  ;;  %v1380_v9 = vmul.f32 0.70710677, %v1321_v57  ;;  %v1382_v10 = vmul.f32 0.70710677, %v1364_v6  ;;  %v1368_v0 = vmul.f32 0.5, %v1317_v52 }
 0xb09   :  { %2240 = verf.f32 %v1378_v3  ;;  %v1381_v11 = vmul.f32 0.70710677, %v1323_v4  ;;  %v1383_v15 = vmul.f32 0.70710677, %v1366_v8  ;;  %v1370_v19 = vmul.f32 0.5, %v1360_v53 }
 0xb0a   :  { %2242 = verf.f32 %v1377_v59  ;;  %v1369_v22 = vmul.f32 0.5, %v1319_v60  ;;  %v1372_v24 = vmul.f32 0.5, %v1321_v57  ;;  %v1371_v27 = vmul.f32 0.5, %v1362_v61  ;;  %v1900_v3 = vld [vmem:[%s2833_s12] ss:$0 sm:$0xff] }
 0xb0b   :  { %2244 = verf.f32 %v1379_v5  ;;  %v1374_v29 = vmul.f32 0.5, %v1364_v6  ;;  %v1373_v35 = vmul.f32 0.5, %v1323_v4  ;;  %v1375_v39 = vmul.f32 0.5, %v1366_v8 }
 0xb0c   :  { %2246 = verf.f32 %v1380_v9 }
 0xb0d   :  { %2248 = verf.f32 %v1382_v10 }
 0xb0e   :  { %2250 = verf.f32 %v1381_v11 }
 0xb0f   :  { %2252 = verf.f32 %v1383_v15 }
 0xb12   :  { %v2239_v16 = vpop.eup %2238 }
 0xb13   :  { %v2241_v30 = vpop.eup %2240  ;;  %v1392_v17 = vadd.f32 1.0, %v2239_v16 }
 0xb14   :  { %v2243_v12 = vpop.eup %2242  ;;  %v1394_v1 = vadd.f32 1.0, %v2241_v30 }
 0xb15   :  { %v2245_v13 = vpop.eup %2244  ;;  %v1393_v23 = vadd.f32 1.0, %v2243_v12  ;;  %v1400_v33 = vmul.f32 %v1392_v17, %v1368_v0 }
 0xb16   :  { %v2247_v18 = vpop.eup %2246  ;;  %v1395_v28 = vadd.f32 1.0, %v2245_v13  ;;  %v1402_v37 = vmul.f32 %v1394_v1, %v1370_v19 }
 0xb17   :  { %v2249_v21 = vpop.eup %2248  ;;  %v1396_v25 = vadd.f32 1.0, %v2247_v18  ;;  %v1401_v41 = vmul.f32 %v1393_v23, %v1369_v22 }
 0xb18   :  { %v2251_v26 = vpop.eup %2250  ;;  %v1398_v31 = vadd.f32 1.0, %v2249_v21  ;;  %v1403_v20 = vmul.f32 %v1395_v28, %v1371_v27 }
 0xb19   :  { %v2253_v32 = vpop.eup %2252  ;;  %v1404_v34 = vmul.f32 %v1396_v25, %v1372_v24  ;;  %v1397_v36 = vadd.f32 1.0, %v2251_v26 }
 0xb1a   :  { %v1406_v38 = vmul.f32 %v1398_v31, %v1374_v29  ;;  %v1399_v40 = vadd.f32 1.0, %v2253_v32 }
 0xb1b   :  { %v1408_v42 = vpack.c.bf16 %v1404_v34, %v1400_v33  ;;  %v1405_v43 = vmul.f32 %v1397_v36, %v1373_v35 }
 0xb1c   :  { %v1410_v44 = vpack.c.bf16 %v1406_v38, %v1402_v37  ;;  %v1407_v45 = vmul.f32 %v1399_v40, %v1375_v39 }
 0xb1d   :  { %v1409_v46 = vpack.c.bf16 %v1405_v43, %v1401_v41 }
 0xb1e   :  { %v1411_v47 = vpack.c.bf16 %v1407_v45, %v1403_v20 }
 0xb1f   :  { %1700 = vmatprep.mubr.bf16.mxu1 %v1409_v46 }
 0xb20   :  { %1741 = vmatprep.mubr.bf16.mxu0 %v1411_v47  ;;  %1701 = vmatmul.mubr.bf16.vlgmr.msra.gmra.mrb[32].mxu1 %v1408_v42 }
 0xb21   :  { %1742 = vmatmul.mubr.bf16.vlgmr.msra.gmra.mrb[20].mxu0 %v1410_v44 }
 0xbf3   :  { %v1959_v48 = vpop.f32.mrb[32].mxu1 }
 0xbf4   :  { %v1981_v49 = vpop.f32.mrb[20].mxu0  ;;  %v1960_v50 = vpop.f32.mrb[33].mxu1 }
 0xbf5   :  { %v1961_v51 = vadd.f32 %v1960_v50, %v1959_v48  ;;  %v1982_v52 = vpop.f32.mrb[21].mxu0  ;;  %v1962_v53 = vpop.f32.mrb[34].mxu1 }
 0xbf6   :  { %v1983_v56 = vadd.f32 %v1982_v52, %v1981_v49  ;;  %v1984_v58 = vpop.f32.mrb[22].mxu0  ;;  %v1963_v60 = vpop.f32.mrb[35].mxu1 }
 0xbf7   :  { %v1964_v61 = vadd.f32 %v1963_v60, %v1962_v53  ;;  %v1985_v62 = vpop.f32.mrb[23].mxu0 }
 0xbf8   :  { %v1744_v63 = vadd.f32 %v1983_v56, %v1961_v51  ;;  %v1986_v2 = vadd.f32 %v1985_v62, %v1984_v58 }
 0xbfa   :  { %v1750_v59 = vadd.f32 %v1744_v63, %v2766_v14  ;;  %v1747_v5 = vadd.f32 %v1986_v2, %v1964_v61 }
 0xbfc   :  { %v1751_v57 = vadd.f32 %v1747_v5, %v2769_v7  ;;  %v1759_v6 = vadd.f32 %v1900_v3, %v1750_v59 }
 0xbfe   :  { %v1760_v54 = vadd.f32 %v1900_v3, %v1751_v57  ;;  %1761 = vst [vmem:[#allocation14] sm:$0xff] %v1759_v6 }
 0xc00   :  { %1762 = vst [vmem:[#allocation14 + $0x8] sm:$0xff] %v1760_v54 }
 0xc01   :  { %2419 = shalt.err (!%p2416_p4)
}
 0xc02   :  { %s2420_s17 = scalar_lea.hbm %s2834_s13, 256 }
 0xc03   :  { %p2421_p5 = scmp.ne.s32.totalorder %s2834_s13, %s2420_s17  ;;  %p2424_p6 = scmp.lt.u32.totalorder %s2420_s17, %s2834_s13 }
 0xc05   :  { %p2426_p7 = pnand %p2424_p6, %p2421_p5 }
 0xc07   :  { %2429 = shalt.err (!%p2426_p7)
}
 0xc08   :  { %1774 = dma.vmem_to_hbm [thread:$0]  %s1769_s15, 256, %s2834_s13, [#allocation4], %s2448_s9, %s2448_s9, %s2449_s19  }
 0xc09   :  { %2438 = dma.done.wait [#allocation4], 256  }
 0xc0a   :  { %2439 = vsyncadd [#allocation4], 4294967040 }
 0xc0b   :  { %1778 = vsyncpa [#allocation3], 1 }
 0xc0c   :  { %1779 = vsyncpa [#allocation6], 1 }
 0xc0d   :  { %1780 = vsyncpa [#allocation9], 1 }
 0xc0e   :  { %1781 = vsyncpa [#allocation12], 1 }
 0xc0f   :  { %1782 = vsyncpa [#allocation4], 1 }

</bundles_post_ra>
